<compile_context>
chip_gen: v5e
topology: v5e:2x2
jax: 0.10.0
libtpu: 0.0.40
codegen_flags: <defaults>
</compile_context>

<pallas_src>
import jax
import jax.numpy as jnp
from jax.experimental import pallas as pl
from jax.experimental.pallas import tpu as pltpu


_CHUNK_ROWS = 32  # rows per inner chunk == width of the partial accumulator


def _vmem_budget():
    """(per-call input double-buffer budget, vmem_limit_bytes) per chip gen."""
    try:
        cap = int(pltpu.get_tpu_info().vmem_capacity_bytes)
    except Exception:  # pragma: no cover - be conservative if query fails
        cap = 64 * 1024 * 1024
    if cap >= 100 * 1024 * 1024:        # v5e / v6e: 128 MiB physical VMEM
        return 24 * 1024 * 1024, 64 * 1024 * 1024
    return 16 * 1024 * 1024, 40 * 1024 * 1024   # v7x: 64 MiB per TensorCore


def _make_solar_kernel(n_types, block_rays, n_samples, n_valid_rays,
                       need_mask, bps):
    """Per (type): running sums of (transparency - sun)^2 and weights * sun,
    accumulated as lane-dense (32, n_samples) partials directly in out_ref."""
    n_chunks = block_rays // _CHUNK_ROWS
    unroll = n_chunks if n_chunks <= 8 else 8

    def kernel(*refs):
        in_refs = refs[:3 * n_types]          # sun_t, trans_t, w_t per type
        out_ref = refs[3 * n_types]           # (1, n_types, 2, 32, S) f32

        p = pl.program_id(0)                  # split axis ("parallel")
        i = pl.program_id(1)                  # ray-block reduction axis

        @pl.when(i == 0)
        def _init():
            out_ref[...] = jnp.zeros_like(out_ref)

        row0 = (p * bps + i) * block_rays     # virtual first row of this block

        def accumulate(masked):
            for t in range(n_types):
                sun_ref = in_refs[3 * t]
                trans_ref = in_refs[3 * t + 1]
                w_ref = in_refs[3 * t + 2]

                def chunk_body(c, carry):
                    acc2, acc3 = carry
                    r = pl.multiple_of(c * _CHUNK_ROWS, _CHUNK_ROWS)
                    sun = sun_ref[pl.ds(r, _CHUNK_ROWS), :].astype(jnp.float32)
                    trans = trans_ref[pl.ds(r, _CHUNK_ROWS), :].astype(
                        jnp.float32)
                    w = w_ref[pl.ds(r, _CHUNK_ROWS), :].astype(jnp.float32)
                    e = trans - sun
                    e2 = e * e
                    ws = w * sun
                    if masked:
                        rows = row0 + r + jax.lax.broadcasted_iota(
                            jnp.int32, (_CHUNK_ROWS, 1), 0)
                        m = rows < n_valid_rays      # select-style masking
                        e2 = jnp.where(m, e2, 0.0)
                        ws = jnp.where(m, ws, 0.0)
                    return acc2 + e2, acc3 + ws

                zero = jnp.zeros((_CHUNK_ROWS, n_samples), jnp.float32)
                acc2, acc3 = jax.lax.fori_loop(
                    0, n_chunks, chunk_body, (zero, zero), unroll=unroll)
                out_ref[0, t, 0] += acc2
                out_ref[0, t, 1] += acc3

        if need_mask:
            is_boundary = (row0 + block_rays) > n_valid_rays

            @pl.when(is_boundary)
            def _boundary():
                accumulate(True)

            @pl.when(jnp.logical_not(is_boundary))
            def _interior():
                accumulate(False)
        else:
            accumulate(False)

    return kernel


def _solar_sums(suns, transs, ws, *, block_rays=None, n_splits=None):
    """Returns (term2_sums, wsun_sums), each shape [n_types] float32:
       term2_sums[t] = sum_{rays,samples} (trans_t - sun_t)^2
       wsun_sums[t]  = sum_{rays,samples} w_t * sun_t
    """
    n_types = len(suns)
    assert n_types >= 1
    n, s = suns[0].shape
    for a in list(suns) + list(transs) + list(ws):
        assert a.shape == (n, s)

    budget, vmem_limit = _vmem_budget()

    if block_rays is None:
        # Double-buffered bytes per ray-row across all streams of all types.
        bytes_per_row = sum(
            s * a.dtype.itemsize
            for a in list(suns) + list(transs) + list(ws)) * 2
        b = int(budget // max(bytes_per_row, 1))
        b = min(b, 2048)
        b = min(b, -(-n // _CHUNK_ROWS) * _CHUNK_ROWS)   # don't exceed rays
        block_rays = max(_CHUNK_ROWS, (b // _CHUNK_ROWS) * _CHUNK_ROWS)
    assert block_rays % _CHUNK_ROWS == 0

    n_blocks = -(-n // block_rays)            # cdiv
    if n_splits is None:
        # 2 splits feed both v7x TensorCores; only when it splits evenly so no
        # duplicate boundary block re-reads HBM.
        n_splits = 2 if (n_blocks >= 2 and n_blocks % 2 == 0) else 1
    bps = -(-n_blocks // n_splits)            # blocks per split
    padded_rows = n_splits * bps * block_rays
    need_mask = padded_rows != n

    def in_map(p, i):
        blk = p * bps + i
        # Clamp padded block indices in-range; their rows are masked anyway
        # (mask uses the *virtual* row index, so duplicates contribute zero).
        return (jnp.minimum(blk, n_blocks - 1), 0)

    in_spec = pl.BlockSpec((block_rays, s), in_map)
    out_spec = pl.BlockSpec((1, n_types, 2, _CHUNK_ROWS, s),
                            lambda p, i: (p, 0, 0, 0, 0))
    out_shape = jax.ShapeDtypeStruct(
        (n_splits, n_types, 2, _CHUNK_ROWS, s), jnp.float32)

    kernel = _make_solar_kernel(n_types, block_rays, s, n, need_mask, bps)

    ordered_inputs = [a for trio in zip(suns, transs, ws) for a in trio]
    in_bytes = sum(a.size * a.dtype.itemsize for a in ordered_inputs)
    out_bytes = n_splits * n_types * 2 * _CHUNK_ROWS * s * 4
    cost = pl.CostEstimate(flops=5 * n * s * n_types, transcendentals=0,
                           bytes_accessed=in_bytes + out_bytes)

    # TODO(synk): if profiling shows the "parallel" split axis does not shard
    # across v7x's two TensorCores, switch it to pltpu.CORE_PARALLEL.
    partials = pl.pallas_call(
        kernel,
        out_shape=out_shape,
        grid_spec=pltpu.PrefetchScalarGridSpec(
            num_scalar_prefetch=0,
            grid=(n_splits, bps),
            in_specs=[in_spec] * (3 * n_types),
            out_specs=out_spec,
        ),
        compiler_params=pltpu.CompilerParams(
            dimension_semantics=("parallel", "arbitrary"),
            vmem_limit_bytes=vmem_limit,
        ),
        cost_estimate=cost,
    )(*ordered_inputs)

    sums = jnp.sum(partials, axis=(0, 3, 4))     # -> (n_types, 2)
    return sums[:, 0], sums[:, 1]


def snerf_loss(inputs, targets, lambda_sc=0.05, *, block_rays=None,
               n_splits=None):
    """Matches SNerfLoss.forward: returns (total_loss, loss_dict)."""
    types = [t for t in ("coarse", "fine") if f"rgb_{t}" in inputs]
    targets_f32 = targets.astype(jnp.float32)

    color = {}
    for typ in types:
        rgb = inputs[f"rgb_{typ}"].astype(jnp.float32)
        # torch.nn.MSELoss(reduction='mean'); tiny [N,3] term -> plain XLA.
        color[typ] = jnp.mean(jnp.square(rgb - targets_f32))

    sc_terms = {}
    if lambda_sc > 0:
        suns, transs, ws = [], [], []
        for typ in types:
            sun = inputs[f"sun_sc_{typ}"]
            if sun.ndim == 3:
                # squeeze(-1) (not bare squeeze) so N_rays==1 stays intact.
                sun = jnp.squeeze(sun, axis=-1)
            suns.append(sun)
            # .detach() in the torch code is a no-op for the forward value.
            # TODO(synk): wrap trans/w in lax.stop_gradient if differentiated.
            transs.append(inputs[f"transparency_sc_{typ}"])
            ws.append(inputs[f"weights_sc_{typ}"])

        t2_sums, wsun_sums = _solar_sums(
            suns, transs, ws, block_rays=block_rays, n_splits=n_splits)
        n = suns[0].shape[0]
        for k, typ in enumerate(types):
            sc_terms[typ] = (
                lambda_sc / 3.0 * (t2_sums[k] / n),          # mean over rays
                lambda_sc / 3.0 * (1.0 - wsun_sums[k] / n),  # mean(1 - sum)
            )

    loss_dict = {}
    for typ in types:
        loss_dict[f"{typ}_color"] = color[typ]
        if lambda_sc > 0:
            loss_dict[f"{typ}_sc_term2"] = sc_terms[typ][0]
            loss_dict[f"{typ}_sc_term3"] = sc_terms[typ][1]

    loss = sum(loss_dict.values())
    return loss, loss_dict


def _reference(inputs, targets, lambda_sc=0.05):
    """Pure-JAX reference mirroring the PyTorch code (f32 math)."""
    loss_dict = {}
    targets = targets.astype(jnp.float32)
    for typ in ("coarse", "fine"):
        if f"rgb_{typ}" not in inputs:
            continue
        rgb = inputs[f"rgb_{typ}"].astype(jnp.float32)
        loss_dict[f"{typ}_color"] = jnp.mean(jnp.square(rgb - targets))
        if lambda_sc > 0:
            sun = inputs[f"sun_sc_{typ}"]
            if sun.ndim == 3:
                sun = jnp.squeeze(sun, axis=-1)
            sun = sun.astype(jnp.float32)
            trans = inputs[f"transparency_sc_{typ}"].astype(jnp.float32)
            w = inputs[f"weights_sc_{typ}"].astype(jnp.float32)
            term2 = jnp.sum(jnp.square(trans - sun), -1)
            term3 = 1 - jnp.sum(w * sun, -1)
            loss_dict[f"{typ}_sc_term2"] = lambda_sc / 3.0 * jnp.mean(term2)
            loss_dict[f"{typ}_sc_term3"] = lambda_sc / 3.0 * jnp.mean(term3)
    return sum(loss_dict.values()), loss_dict


def _check(loss, loss_dict, ref_loss, ref_dict, tag):
    loss = jax.block_until_ready(loss)
    loss_dict = jax.tree_util.tree_map(jax.block_until_ready, loss_dict)
    assert jnp.allclose(loss, ref_loss, rtol=1e-4, atol=1e-5), (
        tag, loss, ref_loss)
    for k in ref_dict:
        assert jnp.allclose(loss_dict[k], ref_dict[k], rtol=1e-4,
                            atol=1e-5), (tag, k)


if __name__ == "__main__":
    # Small but representative shapes: 200 rays (not a multiple of the block
    # so the mask/boundary path is exercised), 128 samples, 3 channels.
    N_RAYS, N_SAMPLES = 200, 128
    key = jax.random.PRNGKey(0)
    keys = jax.random.split(key, 9)

    inputs = {
        "rgb_coarse": jax.random.uniform(keys[0], (N_RAYS, 3), jnp.float32),
        "sun_sc_coarse": jax.random.uniform(keys[1], (N_RAYS, N_SAMPLES, 1),
                                            jnp.float32),
        "transparency_sc_coarse": jax.random.uniform(
            keys[2], (N_RAYS, N_SAMPLES), jnp.float32),
        "weights_sc_coarse": jax.random.uniform(
            keys[3], (N_RAYS, N_SAMPLES), jnp.float32),
        "rgb_fine": jax.random.uniform(keys[4], (N_RAYS, 3), jnp.float32),
        "sun_sc_fine": jax.random.uniform(keys[5], (N_RAYS, N_SAMPLES, 1),
                                          jnp.float32),
        "transparency_sc_fine": jax.random.uniform(
            keys[6], (N_RAYS, N_SAMPLES), jnp.float32),
        "weights_sc_fine": jax.random.uniform(
            keys[7], (N_RAYS, N_SAMPLES), jnp.float32),
    }
    targets = jax.random.uniform(keys[8], (N_RAYS, 3), jnp.float32)

    ref_loss, ref_dict = _reference(inputs, targets, lambda_sc=0.05)

    # Run 1: default auto-sized block (single partial block, boundary path).
    loss, loss_dict = snerf_loss(inputs, targets, lambda_sc=0.05)
    _check(loss, loss_dict, ref_loss, ref_dict, "default")

    # Run 2: forced small block + 2 splits -> exercises multi-block grid,
    # interior unmasked path, boundary/duplicate block masking and the split
    # "parallel" axis.
    loss2, loss_dict2 = snerf_loss(inputs, targets, lambda_sc=0.05,
                                   block_rays=32, n_splits=2)
    _check(loss2, loss_dict2, ref_loss, ref_dict, "small_block")

    # Run 3: bf16 per-sample streams (native-dtype streaming, f32 accumulate).
    inputs_bf16 = dict(inputs)
    for typ in ("coarse", "fine"):
        for name in ("sun_sc", "transparency_sc", "weights_sc"):
            k = f"{name}_{typ}"
            inputs_bf16[k] = inputs[k].astype(jnp.bfloat16)
    ref_loss_b, ref_dict_b = _reference(inputs_bf16, targets, lambda_sc=0.05)
    loss3, loss_dict3 = snerf_loss(inputs_bf16, targets, lambda_sc=0.05)
    _check(loss3, loss_dict3, ref_loss_b, ref_dict_b, "bf16")

    print("KERNEL_OK")
</pallas_src>

<mosaic_0001>
module attributes {stable_mosaic.version = 11 : i64} {
  func.func @kernel(%arg0: i32, %arg1: i32, %arg2: memref<224x128xf32, #tpu.memory_space<vmem>>, %arg3: memref<224x128xf32, #tpu.memory_space<vmem>>, %arg4: memref<224x128xf32, #tpu.memory_space<vmem>>, %arg5: memref<224x128xf32, #tpu.memory_space<vmem>>, %arg6: memref<224x128xf32, #tpu.memory_space<vmem>>, %arg7: memref<224x128xf32, #tpu.memory_space<vmem>>, %arg8: memref<1x2x2x32x128xf32, #tpu.memory_space<vmem>>) attributes {dimension_semantics = [#tpu.dimension_semantics<parallel>, #tpu.dimension_semantics<arbitrary>], iteration_bounds = array<i64: 1, 1>, scalar_prefetch = 0 : i64, scratch_operands = 0 : i64, tpu.core_type = #tpu.core_type<tc>, window_params = [{transform_indices = @transform_0, window_bounds = array<i64: 224, 128>}, {transform_indices = @transform_1, window_bounds = array<i64: 224, 128>}, {transform_indices = @transform_2, window_bounds = array<i64: 224, 128>}, {transform_indices = @transform_3, window_bounds = array<i64: 224, 128>}, {transform_indices = @transform_4, window_bounds = array<i64: 224, 128>}, {transform_indices = @transform_5, window_bounds = array<i64: 224, 128>}, {transform_indices = @transform_6, window_bounds = array<i64: 1, 2, 2, 32, 128>}]} {
    %c0_i32 = arith.constant 0 : i32
    %0 = arith.cmpi eq, %arg1, %c0_i32 : i32
    %1 = arith.extui %0 : i1 to i32
    %c0_i32_0 = arith.constant 0 : i32
    %2 = arith.cmpi ne, %1, %c0_i32_0 : i32
    scf.if %2 {
      %cst = arith.constant 0.000000e+00 : f32
      %13 = vector.broadcast %cst : f32 to vector<1x2x2x32x128xf32>
      %c0 = arith.constant 0 : index
      %c0_4 = arith.constant 0 : index
      %c0_5 = arith.constant 0 : index
      %c0_6 = arith.constant 0 : index
      %c0_7 = arith.constant 0 : index
      %14 = vector.load %arg8[%c0, %c0_4, %c0_5, %c0_6, %c0_7] : memref<1x2x2x32x128xf32, #tpu.memory_space<vmem>>, vector<1x2x2x32x128xf32>
      tpu.vector_store %arg8[%c0, %c0_4, %c0_5, %c0_6, %c0_7], %13 {strides = array<i32>} : memref<1x2x2x32x128xf32, #tpu.memory_space<vmem>>, vector<1x2x2x32x128xf32>,
    } else {
    }
    %c1_i32 = arith.constant 1 : i32
    %3 = arith.muli %arg0, %c1_i32 : i32
    %4 = arith.addi %3, %arg1 : i32
    %c224_i32 = arith.constant 224 : i32
    %5 = arith.muli %4, %c224_i32 : i32
    %c224_i32_1 = arith.constant 224 : i32
    %6 = arith.addi %5, %c224_i32_1 : i32
    %c200_i32 = arith.constant 200 : i32
    %7 = arith.cmpi sgt, %6, %c200_i32 : i32
    %8 = arith.extui %7 : i1 to i32
    %c0_i32_2 = arith.constant 0 : i32
    %9 = arith.cmpi ne, %8, %c0_i32_2 : i32
    scf.if %9 {
      %cst = arith.constant 0.000000e+00 : f32
      %13 = vector.broadcast %cst : f32 to vector<32x128xf32>
      %c0_i32_4 = arith.constant 0 : i32
      %c32_i32 = arith.constant 32 : i32
      %14 = arith.muli %c0_i32_4, %c32_i32 : i32
      %15 = tpu.assume_multiple %14, 32 : i32
      %16 = arith.index_cast %15 : i32 to index
      %c0 = arith.constant 0 : index
      %17 = vector.load %arg2[%16, %c0] : memref<224x128xf32, #tpu.memory_space<vmem>>, vector<32x128xf32>
      %18 = arith.index_cast %15 : i32 to index
      %c0_5 = arith.constant 0 : index
      %19 = vector.load %arg3[%18, %c0_5] : memref<224x128xf32, #tpu.memory_space<vmem>>, vector<32x128xf32>
      %20 = arith.index_cast %15 : i32 to index
      %c0_6 = arith.constant 0 : index
      %21 = vector.load %arg4[%20, %c0_6] : memref<224x128xf32, #tpu.memory_space<vmem>>, vector<32x128xf32>
      %22 = arith.subf %19, %17 : vector<32x128xf32>
      %23 = arith.mulf %22, %22 : vector<32x128xf32>
      %24 = arith.mulf %21, %17 : vector<32x128xf32>
      %25 = arith.addi %5, %15 : i32
      %26 = tpu.iota {dimensions = array<i32: 0>} : vector<32x1xi32>
      %27 = vector.broadcast %25 : i32 to vector<32x1xi32>
      %28 = arith.addi %27, %26 : vector<32x1xi32>
      %c200_i32_7 = arith.constant 200 : i32
      %29 = vector.broadcast %c200_i32_7 : i32 to vector<32x1xi32>
      %30 = arith.cmpi slt, %28, %29 : vector<32x1xi32>
      %cst_8 = arith.constant 0.000000e+00 : f32
      %31 = vector.shape_cast %30 : vector<32x1xi1> to vector<32x1xi1>
      %32 = vector.broadcast %31 : vector<32x1xi1> to vector<32x128xi1>
      %33 = vector.broadcast %cst_8 : f32 to vector<32x128xf32>
      %34 = arith.select %32, %23, %33 : vector<32x128xi1>, vector<32x128xf32>
      %cst_9 = arith.constant 0.000000e+00 : f32
      %35 = vector.shape_cast %30 : vector<32x1xi1> to vector<32x1xi1>
      %36 = vector.broadcast %35 : vector<32x1xi1> to vector<32x128xi1>
      %37 = vector.broadcast %cst_9 : f32 to vector<32x128xf32>
      %38 = arith.select %36, %24, %37 : vector<32x128xi1>, vector<32x128xf32>
      %39 = arith.addf %13, %34 : vector<32x128xf32>
      %40 = arith.addf %13, %38 : vector<32x128xf32>
      %c1_i32_10 = arith.constant 1 : i32
      %c32_i32_11 = arith.constant 32 : i32
      %41 = arith.muli %c1_i32_10, %c32_i32_11 : i32
      %42 = tpu.assume_multiple %41, 32 : i32
      %43 = arith.index_cast %42 : i32 to index
      %c0_12 = arith.constant 0 : index
      %44 = vector.load %arg2[%43, %c0_12] : memref<224x128xf32, #tpu.memory_space<vmem>>, vector<32x128xf32>
      %45 = arith.index_cast %42 : i32 to index
      %c0_13 = arith.constant 0 : index
      %46 = vector.load %arg3[%45, %c0_13] : memref<224x128xf32, #tpu.memory_space<vmem>>, vector<32x128xf32>
      %47 = arith.index_cast %42 : i32 to index
      %c0_14 = arith.constant 0 : index
      %48 = vector.load %arg4[%47, %c0_14] : memref<224x128xf32, #tpu.memory_space<vmem>>, vector<32x128xf32>
      %49 = arith.subf %46, %44 : vector<32x128xf32>
      %50 = arith.mulf %49, %49 : vector<32x128xf32>
      %51 = arith.mulf %48, %44 : vector<32x128xf32>
      %52 = arith.addi %5, %42 : i32
      %53 = tpu.iota {dimensions = array<i32: 0>} : vector<32x1xi32>
      %54 = vector.broadcast %52 : i32 to vector<32x1xi32>
      %55 = arith.addi %54, %53 : vector<32x1xi32>
      %c200_i32_15 = arith.constant 200 : i32
      %56 = vector.broadcast %c200_i32_15 : i32 to vector<32x1xi32>
      %57 = arith.cmpi slt, %55, %56 : vector<32x1xi32>
      %cst_16 = arith.constant 0.000000e+00 : f32
      %58 = vector.shape_cast %57 : vector<32x1xi1> to vector<32x1xi1>
      %59 = vector.broadcast %58 : vector<32x1xi1> to vector<32x128xi1>
      %60 = vector.broadcast %cst_16 : f32 to vector<32x128xf32>
      %61 = arith.select %59, %50, %60 : vector<32x128xi1>, vector<32x128xf32>
      %cst_17 = arith.constant 0.000000e+00 : f32
      %62 = vector.shape_cast %57 : vector<32x1xi1> to vector<32x1xi1>
      %63 = vector.broadcast %62 : vector<32x1xi1> to vector<32x128xi1>
      %64 = vector.broadcast %cst_17 : f32 to vector<32x128xf32>
      %65 = arith.select %63, %51, %64 : vector<32x128xi1>, vector<32x128xf32>
      %66 = arith.addf %39, %61 : vector<32x128xf32>
      %67 = arith.addf %40, %65 : vector<32x128xf32>
      %c2_i32 = arith.constant 2 : i32
      %c32_i32_18 = arith.constant 32 : i32
      %68 = arith.muli %c2_i32, %c32_i32_18 : i32
      %69 = tpu.assume_multiple %68, 32 : i32
      %70 = arith.index_cast %69 : i32 to index
      %c0_19 = arith.constant 0 : index
      %71 = vector.load %arg2[%70, %c0_19] : memref<224x128xf32, #tpu.memory_space<vmem>>, vector<32x128xf32>
      %72 = arith.index_cast %69 : i32 to index
      %c0_20 = arith.constant 0 : index
      %73 = vector.load %arg3[%72, %c0_20] : memref<224x128xf32, #tpu.memory_space<vmem>>, vector<32x128xf32>
      %74 = arith.index_cast %69 : i32 to index
      %c0_21 = arith.constant 0 : index
      %75 = vector.load %arg4[%74, %c0_21] : memref<224x128xf32, #tpu.memory_space<vmem>>, vector<32x128xf32>
      %76 = arith.subf %73, %71 : vector<32x128xf32>
      %77 = arith.mulf %76, %76 : vector<32x128xf32>
      %78 = arith.mulf %75, %71 : vector<32x128xf32>
      %79 = arith.addi %5, %69 : i32
      %80 = tpu.iota {dimensions = array<i32: 0>} : vector<32x1xi32>
      %81 = vector.broadcast %79 : i32 to vector<32x1xi32>
      %82 = arith.addi %81, %80 : vector<32x1xi32>
      %c200_i32_22 = arith.constant 200 : i32
      %83 = vector.broadcast %c200_i32_22 : i32 to vector<32x1xi32>
      %84 = arith.cmpi slt, %82, %83 : vector<32x1xi32>
      %cst_23 = arith.constant 0.000000e+00 : f32
      %85 = vector.shape_cast %84 : vector<32x1xi1> to vector<32x1xi1>
      %86 = vector.broadcast %85 : vector<32x1xi1> to vector<32x128xi1>
      %87 = vector.broadcast %cst_23 : f32 to vector<32x128xf32>
      %88 = arith.select %86, %77, %87 : vector<32x128xi1>, vector<32x128xf32>
      %cst_24 = arith.constant 0.000000e+00 : f32
      %89 = vector.shape_cast %84 : vector<32x1xi1> to vector<32x1xi1>
      %90 = vector.broadcast %89 : vector<32x1xi1> to vector<32x128xi1>
      %91 = vector.broadcast %cst_24 : f32 to vector<32x128xf32>
      %92 = arith.select %90, %78, %91 : vector<32x128xi1>, vector<32x128xf32>
      %93 = arith.addf %66, %88 : vector<32x128xf32>
      %94 = arith.addf %67, %92 : vector<32x128xf32>
      %c3_i32 = arith.constant 3 : i32
      %c32_i32_25 = arith.constant 32 : i32
      %95 = arith.muli %c3_i32, %c32_i32_25 : i32
      %96 = tpu.assume_multiple %95, 32 : i32
      %97 = arith.index_cast %96 : i32 to index
      %c0_26 = arith.constant 0 : index
      %98 = vector.load %arg2[%97, %c0_26] : memref<224x128xf32, #tpu.memory_space<vmem>>, vector<32x128xf32>
      %99 = arith.index_cast %96 : i32 to index
      %c0_27 = arith.constant 0 : index
      %100 = vector.load %arg3[%99, %c0_27] : memref<224x128xf32, #tpu.memory_space<vmem>>, vector<32x128xf32>
      %101 = arith.index_cast %96 : i32 to index
      %c0_28 = arith.constant 0 : index
      %102 = vector.load %arg4[%101, %c0_28] : memref<224x128xf32, #tpu.memory_space<vmem>>, vector<32x128xf32>
      %103 = arith.subf %100, %98 : vector<32x128xf32>
      %104 = arith.mulf %103, %103 : vector<32x128xf32>
      %105 = arith.mulf %102, %98 : vector<32x128xf32>
      %106 = arith.addi %5, %96 : i32
      %107 = tpu.iota {dimensions = array<i32: 0>} : vector<32x1xi32>
      %108 = vector.broadcast %106 : i32 to vector<32x1xi32>
      %109 = arith.addi %108, %107 : vector<32x1xi32>
      %c200_i32_29 = arith.constant 200 : i32
      %110 = vector.broadcast %c200_i32_29 : i32 to vector<32x1xi32>
      %111 = arith.cmpi slt, %109, %110 : vector<32x1xi32>
      %cst_30 = arith.constant 0.000000e+00 : f32
      %112 = vector.shape_cast %111 : vector<32x1xi1> to vector<32x1xi1>
      %113 = vector.broadcast %112 : vector<32x1xi1> to vector<32x128xi1>
      %114 = vector.broadcast %cst_30 : f32 to vector<32x128xf32>
      %115 = arith.select %113, %104, %114 : vector<32x128xi1>, vector<32x128xf32>
      %cst_31 = arith.constant 0.000000e+00 : f32
      %116 = vector.shape_cast %111 : vector<32x1xi1> to vector<32x1xi1>
      %117 = vector.broadcast %116 : vector<32x1xi1> to vector<32x128xi1>
      %118 = vector.broadcast %cst_31 : f32 to vector<32x128xf32>
      %119 = arith.select %117, %105, %118 : vector<32x128xi1>, vector<32x128xf32>
      %120 = arith.addf %93, %115 : vector<32x128xf32>
      %121 = arith.addf %94, %119 : vector<32x128xf32>
      %c4_i32 = arith.constant 4 : i32
      %c32_i32_32 = arith.constant 32 : i32
      %122 = arith.muli %c4_i32, %c32_i32_32 : i32
      %123 = tpu.assume_multiple %122, 32 : i32
      %124 = arith.index_cast %123 : i32 to index
      %c0_33 = arith.constant 0 : index
      %125 = vector.load %arg2[%124, %c0_33] : memref<224x128xf32, #tpu.memory_space<vmem>>, vector<32x128xf32>
      %126 = arith.index_cast %123 : i32 to index
      %c0_34 = arith.constant 0 : index
      %127 = vector.load %arg3[%126, %c0_34] : memref<224x128xf32, #tpu.memory_space<vmem>>, vector<32x128xf32>
      %128 = arith.index_cast %123 : i32 to index
      %c0_35 = arith.constant 0 : index
      %129 = vector.load %arg4[%128, %c0_35] : memref<224x128xf32, #tpu.memory_space<vmem>>, vector<32x128xf32>
      %130 = arith.subf %127, %125 : vector<32x128xf32>
      %131 = arith.mulf %130, %130 : vector<32x128xf32>
      %132 = arith.mulf %129, %125 : vector<32x128xf32>
      %133 = arith.addi %5, %123 : i32
      %134 = tpu.iota {dimensions = array<i32: 0>} : vector<32x1xi32>
      %135 = vector.broadcast %133 : i32 to vector<32x1xi32>
      %136 = arith.addi %135, %134 : vector<32x1xi32>
      %c200_i32_36 = arith.constant 200 : i32
      %137 = vector.broadcast %c200_i32_36 : i32 to vector<32x1xi32>
      %138 = arith.cmpi slt, %136, %137 : vector<32x1xi32>
      %cst_37 = arith.constant 0.000000e+00 : f32
      %139 = vector.shape_cast %138 : vector<32x1xi1> to vector<32x1xi1>
      %140 = vector.broadcast %139 : vector<32x1xi1> to vector<32x128xi1>
      %141 = vector.broadcast %cst_37 : f32 to vector<32x128xf32>
      %142 = arith.select %140, %131, %141 : vector<32x128xi1>, vector<32x128xf32>
      %cst_38 = arith.constant 0.000000e+00 : f32
      %143 = vector.shape_cast %138 : vector<32x1xi1> to vector<32x1xi1>
      %144 = vector.broadcast %143 : vector<32x1xi1> to vector<32x128xi1>
      %145 = vector.broadcast %cst_38 : f32 to vector<32x128xf32>
      %146 = arith.select %144, %132, %145 : vector<32x128xi1>, vector<32x128xf32>
      %147 = arith.addf %120, %142 : vector<32x128xf32>
      %148 = arith.addf %121, %146 : vector<32x128xf32>
      %c5_i32 = arith.constant 5 : i32
      %c32_i32_39 = arith.constant 32 : i32
      %149 = arith.muli %c5_i32, %c32_i32_39 : i32
      %150 = tpu.assume_multiple %149, 32 : i32
      %151 = arith.index_cast %150 : i32 to index
      %c0_40 = arith.constant 0 : index
      %152 = vector.load %arg2[%151, %c0_40] : memref<224x128xf32, #tpu.memory_space<vmem>>, vector<32x128xf32>
      %153 = arith.index_cast %150 : i32 to index
      %c0_41 = arith.constant 0 : index
      %154 = vector.load %arg3[%153, %c0_41] : memref<224x128xf32, #tpu.memory_space<vmem>>, vector<32x128xf32>
      %155 = arith.index_cast %150 : i32 to index
      %c0_42 = arith.constant 0 : index
      %156 = vector.load %arg4[%155, %c0_42] : memref<224x128xf32, #tpu.memory_space<vmem>>, vector<32x128xf32>
      %157 = arith.subf %154, %152 : vector<32x128xf32>
      %158 = arith.mulf %157, %157 : vector<32x128xf32>
      %159 = arith.mulf %156, %152 : vector<32x128xf32>
      %160 = arith.addi %5, %150 : i32
      %161 = tpu.iota {dimensions = array<i32: 0>} : vector<32x1xi32>
      %162 = vector.broadcast %160 : i32 to vector<32x1xi32>
      %163 = arith.addi %162, %161 : vector<32x1xi32>
      %c200_i32_43 = arith.constant 200 : i32
      %164 = vector.broadcast %c200_i32_43 : i32 to vector<32x1xi32>
      %165 = arith.cmpi slt, %163, %164 : vector<32x1xi32>
      %cst_44 = arith.constant 0.000000e+00 : f32
      %166 = vector.shape_cast %165 : vector<32x1xi1> to vector<32x1xi1>
      %167 = vector.broadcast %166 : vector<32x1xi1> to vector<32x128xi1>
      %168 = vector.broadcast %cst_44 : f32 to vector<32x128xf32>
      %169 = arith.select %167, %158, %168 : vector<32x128xi1>, vector<32x128xf32>
      %cst_45 = arith.constant 0.000000e+00 : f32
      %170 = vector.shape_cast %165 : vector<32x1xi1> to vector<32x1xi1>
      %171 = vector.broadcast %170 : vector<32x1xi1> to vector<32x128xi1>
      %172 = vector.broadcast %cst_45 : f32 to vector<32x128xf32>
      %173 = arith.select %171, %159, %172 : vector<32x128xi1>, vector<32x128xf32>
      %174 = arith.addf %147, %169 : vector<32x128xf32>
      %175 = arith.addf %148, %173 : vector<32x128xf32>
      %c6_i32 = arith.constant 6 : i32
      %c32_i32_46 = arith.constant 32 : i32
      %176 = arith.muli %c6_i32, %c32_i32_46 : i32
      %177 = tpu.assume_multiple %176, 32 : i32
      %178 = arith.index_cast %177 : i32 to index
      %c0_47 = arith.constant 0 : index
      %179 = vector.load %arg2[%178, %c0_47] : memref<224x128xf32, #tpu.memory_space<vmem>>, vector<32x128xf32>
      %180 = arith.index_cast %177 : i32 to index
      %c0_48 = arith.constant 0 : index
      %181 = vector.load %arg3[%180, %c0_48] : memref<224x128xf32, #tpu.memory_space<vmem>>, vector<32x128xf32>
      %182 = arith.index_cast %177 : i32 to index
      %c0_49 = arith.constant 0 : index
      %183 = vector.load %arg4[%182, %c0_49] : memref<224x128xf32, #tpu.memory_space<vmem>>, vector<32x128xf32>
      %184 = arith.subf %181, %179 : vector<32x128xf32>
      %185 = arith.mulf %184, %184 : vector<32x128xf32>
      %186 = arith.mulf %183, %179 : vector<32x128xf32>
      %187 = arith.addi %5, %177 : i32
      %188 = tpu.iota {dimensions = array<i32: 0>} : vector<32x1xi32>
      %189 = vector.broadcast %187 : i32 to vector<32x1xi32>
      %190 = arith.addi %189, %188 : vector<32x1xi32>
      %c200_i32_50 = arith.constant 200 : i32
      %191 = vector.broadcast %c200_i32_50 : i32 to vector<32x1xi32>
      %192 = arith.cmpi slt, %190, %191 : vector<32x1xi32>
      %cst_51 = arith.constant 0.000000e+00 : f32
      %193 = vector.shape_cast %192 : vector<32x1xi1> to vector<32x1xi1>
      %194 = vector.broadcast %193 : vector<32x1xi1> to vector<32x128xi1>
      %195 = vector.broadcast %cst_51 : f32 to vector<32x128xf32>
      %196 = arith.select %194, %185, %195 : vector<32x128xi1>, vector<32x128xf32>
      %cst_52 = arith.constant 0.000000e+00 : f32
      %197 = vector.shape_cast %192 : vector<32x1xi1> to vector<32x1xi1>
      %198 = vector.broadcast %197 : vector<32x1xi1> to vector<32x128xi1>
      %199 = vector.broadcast %cst_52 : f32 to vector<32x128xf32>
      %200 = arith.select %198, %186, %199 : vector<32x128xi1>, vector<32x128xf32>
      %201 = arith.addf %174, %196 : vector<32x128xf32>
      %202 = arith.addf %175, %200 : vector<32x128xf32>
      %c7_i32 = arith.constant 7 : i32
      %c0_53 = arith.constant 0 : index
      %c0_54 = arith.constant 0 : index
      %c0_55 = arith.constant 0 : index
      %c0_56 = arith.constant 0 : index
      %c0_57 = arith.constant 0 : index
      %203 = vector.load %arg8[%c0_53, %c0_54, %c0_55, %c0_56, %c0_57] : memref<1x2x2x32x128xf32, #tpu.memory_space<vmem>>, vector<1x1x1x32x128xf32>
      %204 = vector.shape_cast %203 : vector<1x1x1x32x128xf32> to vector<32x128xf32>
      %205 = arith.addf %204, %201 : vector<32x128xf32>
      %c0_58 = arith.constant 0 : index
      %c0_59 = arith.constant 0 : index
      %c0_60 = arith.constant 0 : index
      %c0_61 = arith.constant 0 : index
      %c0_62 = arith.constant 0 : index
      %206 = vector.load %arg8[%c0_58, %c0_59, %c0_60, %c0_61, %c0_62] : memref<1x2x2x32x128xf32, #tpu.memory_space<vmem>>, vector<1x1x1x32x128xf32>
      %207 = vector.shape_cast %206 : vector<1x1x1x32x128xf32> to vector<32x128xf32>
      %208 = vector.shape_cast %205 : vector<32x128xf32> to vector<1x1x1x32x128xf32>
      tpu.vector_store %arg8[%c0_58, %c0_59, %c0_60, %c0_61, %c0_62], %208 {strides = array<i32>} : memref<1x2x2x32x128xf32, #tpu.memory_space<vmem>>, vector<1x1x1x32x128xf32>,
      %c0_63 = arith.constant 0 : index
      %c0_64 = arith.constant 0 : index
      %c1 = arith.constant 1 : index
      %c0_65 = arith.constant 0 : index
      %c0_66 = arith.constant 0 : index
      %209 = vector.load %arg8[%c0_63, %c0_64, %c1, %c0_65, %c0_66] : memref<1x2x2x32x128xf32, #tpu.memory_space<vmem>>, vector<1x1x1x32x128xf32>
      %210 = vector.shape_cast %209 : vector<1x1x1x32x128xf32> to vector<32x128xf32>
      %211 = arith.addf %210, %202 : vector<32x128xf32>
      %c0_67 = arith.constant 0 : index
      %c0_68 = arith.constant 0 : index
      %c1_69 = arith.constant 1 : index
      %c0_70 = arith.constant 0 : index
      %c0_71 = arith.constant 0 : index
      %212 = vector.load %arg8[%c0_67, %c0_68, %c1_69, %c0_70, %c0_71] : memref<1x2x2x32x128xf32, #tpu.memory_space<vmem>>, vector<1x1x1x32x128xf32>
      %213 = vector.shape_cast %212 : vector<1x1x1x32x128xf32> to vector<32x128xf32>
      %214 = vector.shape_cast %211 : vector<32x128xf32> to vector<1x1x1x32x128xf32>
      tpu.vector_store %arg8[%c0_67, %c0_68, %c1_69, %c0_70, %c0_71], %214 {strides = array<i32>} : memref<1x2x2x32x128xf32, #tpu.memory_space<vmem>>, vector<1x1x1x32x128xf32>,
      %cst_72 = arith.constant 0.000000e+00 : f32
      %215 = vector.broadcast %cst_72 : f32 to vector<32x128xf32>
      %c0_i32_73 = arith.constant 0 : i32
      %c32_i32_74 = arith.constant 32 : i32
      %216 = arith.muli %c0_i32_73, %c32_i32_74 : i32
      %217 = tpu.assume_multiple %216, 32 : i32
      %218 = arith.index_cast %217 : i32 to index
      %c0_75 = arith.constant 0 : index
      %219 = vector.load %arg5[%218, %c0_75] : memref<224x128xf32, #tpu.memory_space<vmem>>, vector<32x128xf32>
      %220 = arith.index_cast %217 : i32 to index
      %c0_76 = arith.constant 0 : index
      %221 = vector.load %arg6[%220, %c0_76] : memref<224x128xf32, #tpu.memory_space<vmem>>, vector<32x128xf32>
      %222 = arith.index_cast %217 : i32 to index
      %c0_77 = arith.constant 0 : index
      %223 = vector.load %arg7[%222, %c0_77] : memref<224x128xf32, #tpu.memory_space<vmem>>, vector<32x128xf32>
      %224 = arith.subf %221, %219 : vector<32x128xf32>
      %225 = arith.mulf %224, %224 : vector<32x128xf32>
      %226 = arith.mulf %223, %219 : vector<32x128xf32>
      %227 = arith.addi %5, %217 : i32
      %228 = tpu.iota {dimensions = array<i32: 0>} : vector<32x1xi32>
      %229 = vector.broadcast %227 : i32 to vector<32x1xi32>
      %230 = arith.addi %229, %228 : vector<32x1xi32>
      %c200_i32_78 = arith.constant 200 : i32
      %231 = vector.broadcast %c200_i32_78 : i32 to vector<32x1xi32>
      %232 = arith.cmpi slt, %230, %231 : vector<32x1xi32>
      %cst_79 = arith.constant 0.000000e+00 : f32
      %233 = vector.shape_cast %232 : vector<32x1xi1> to vector<32x1xi1>
      %234 = vector.broadcast %233 : vector<32x1xi1> to vector<32x128xi1>
      %235 = vector.broadcast %cst_79 : f32 to vector<32x128xf32>
      %236 = arith.select %234, %225, %235 : vector<32x128xi1>, vector<32x128xf32>
      %cst_80 = arith.constant 0.000000e+00 : f32
      %237 = vector.shape_cast %232 : vector<32x1xi1> to vector<32x1xi1>
      %238 = vector.broadcast %237 : vector<32x1xi1> to vector<32x128xi1>
      %239 = vector.broadcast %cst_80 : f32 to vector<32x128xf32>
      %240 = arith.select %238, %226, %239 : vector<32x128xi1>, vector<32x128xf32>
      %241 = arith.addf %215, %236 : vector<32x128xf32>
      %242 = arith.addf %215, %240 : vector<32x128xf32>
      %c1_i32_81 = arith.constant 1 : i32
      %c32_i32_82 = arith.constant 32 : i32
      %243 = arith.muli %c1_i32_81, %c32_i32_82 : i32
      %244 = tpu.assume_multiple %243, 32 : i32
      %245 = arith.index_cast %244 : i32 to index
      %c0_83 = arith.constant 0 : index
      %246 = vector.load %arg5[%245, %c0_83] : memref<224x128xf32, #tpu.memory_space<vmem>>, vector<32x128xf32>
      %247 = arith.index_cast %244 : i32 to index
      %c0_84 = arith.constant 0 : index
      %248 = vector.load %arg6[%247, %c0_84] : memref<224x128xf32, #tpu.memory_space<vmem>>, vector<32x128xf32>
      %249 = arith.index_cast %244 : i32 to index
      %c0_85 = arith.constant 0 : index
      %250 = vector.load %arg7[%249, %c0_85] : memref<224x128xf32, #tpu.memory_space<vmem>>, vector<32x128xf32>
      %251 = arith.subf %248, %246 : vector<32x128xf32>
      %252 = arith.mulf %251, %251 : vector<32x128xf32>
      %253 = arith.mulf %250, %246 : vector<32x128xf32>
      %254 = arith.addi %5, %244 : i32
      %255 = tpu.iota {dimensions = array<i32: 0>} : vector<32x1xi32>
      %256 = vector.broadcast %254 : i32 to vector<32x1xi32>
      %257 = arith.addi %256, %255 : vector<32x1xi32>
      %c200_i32_86 = arith.constant 200 : i32
      %258 = vector.broadcast %c200_i32_86 : i32 to vector<32x1xi32>
      %259 = arith.cmpi slt, %257, %258 : vector<32x1xi32>
      %cst_87 = arith.constant 0.000000e+00 : f32
      %260 = vector.shape_cast %259 : vector<32x1xi1> to vector<32x1xi1>
      %261 = vector.broadcast %260 : vector<32x1xi1> to vector<32x128xi1>
      %262 = vector.broadcast %cst_87 : f32 to vector<32x128xf32>
      %263 = arith.select %261, %252, %262 : vector<32x128xi1>, vector<32x128xf32>
      %cst_88 = arith.constant 0.000000e+00 : f32
      %264 = vector.shape_cast %259 : vector<32x1xi1> to vector<32x1xi1>
      %265 = vector.broadcast %264 : vector<32x1xi1> to vector<32x128xi1>
      %266 = vector.broadcast %cst_88 : f32 to vector<32x128xf32>
      %267 = arith.select %265, %253, %266 : vector<32x128xi1>, vector<32x128xf32>
      %268 = arith.addf %241, %263 : vector<32x128xf32>
      %269 = arith.addf %242, %267 : vector<32x128xf32>
      %c2_i32_89 = arith.constant 2 : i32
      %c32_i32_90 = arith.constant 32 : i32
      %270 = arith.muli %c2_i32_89, %c32_i32_90 : i32
      %271 = tpu.assume_multiple %270, 32 : i32
      %272 = arith.index_cast %271 : i32 to index
      %c0_91 = arith.constant 0 : index
      %273 = vector.load %arg5[%272, %c0_91] : memref<224x128xf32, #tpu.memory_space<vmem>>, vector<32x128xf32>
      %274 = arith.index_cast %271 : i32 to index
      %c0_92 = arith.constant 0 : index
      %275 = vector.load %arg6[%274, %c0_92] : memref<224x128xf32, #tpu.memory_space<vmem>>, vector<32x128xf32>
      %276 = arith.index_cast %271 : i32 to index
      %c0_93 = arith.constant 0 : index
      %277 = vector.load %arg7[%276, %c0_93] : memref<224x128xf32, #tpu.memory_space<vmem>>, vector<32x128xf32>
      %278 = arith.subf %275, %273 : vector<32x128xf32>
      %279 = arith.mulf %278, %278 : vector<32x128xf32>
      %280 = arith.mulf %277, %273 : vector<32x128xf32>
      %281 = arith.addi %5, %271 : i32
      %282 = tpu.iota {dimensions = array<i32: 0>} : vector<32x1xi32>
      %283 = vector.broadcast %281 : i32 to vector<32x1xi32>
      %284 = arith.addi %283, %282 : vector<32x1xi32>
      %c200_i32_94 = arith.constant 200 : i32
      %285 = vector.broadcast %c200_i32_94 : i32 to vector<32x1xi32>
      %286 = arith.cmpi slt, %284, %285 : vector<32x1xi32>
      %cst_95 = arith.constant 0.000000e+00 : f32
      %287 = vector.shape_cast %286 : vector<32x1xi1> to vector<32x1xi1>
      %288 = vector.broadcast %287 : vector<32x1xi1> to vector<32x128xi1>
      %289 = vector.broadcast %cst_95 : f32 to vector<32x128xf32>
      %290 = arith.select %288, %279, %289 : vector<32x128xi1>, vector<32x128xf32>
      %cst_96 = arith.constant 0.000000e+00 : f32
      %291 = vector.shape_cast %286 : vector<32x1xi1> to vector<32x1xi1>
      %292 = vector.broadcast %291 : vector<32x1xi1> to vector<32x128xi1>
      %293 = vector.broadcast %cst_96 : f32 to vector<32x128xf32>
      %294 = arith.select %292, %280, %293 : vector<32x128xi1>, vector<32x128xf32>
      %295 = arith.addf %268, %290 : vector<32x128xf32>
      %296 = arith.addf %269, %294 : vector<32x128xf32>
      %c3_i32_97 = arith.constant 3 : i32
      %c32_i32_98 = arith.constant 32 : i32
      %297 = arith.muli %c3_i32_97, %c32_i32_98 : i32
      %298 = tpu.assume_multiple %297, 32 : i32
      %299 = arith.index_cast %298 : i32 to index
      %c0_99 = arith.constant 0 : index
      %300 = vector.load %arg5[%299, %c0_99] : memref<224x128xf32, #tpu.memory_space<vmem>>, vector<32x128xf32>
      %301 = arith.index_cast %298 : i32 to index
      %c0_100 = arith.constant 0 : index
      %302 = vector.load %arg6[%301, %c0_100] : memref<224x128xf32, #tpu.memory_space<vmem>>, vector<32x128xf32>
      %303 = arith.index_cast %298 : i32 to index
      %c0_101 = arith.constant 0 : index
      %304 = vector.load %arg7[%303, %c0_101] : memref<224x128xf32, #tpu.memory_space<vmem>>, vector<32x128xf32>
      %305 = arith.subf %302, %300 : vector<32x128xf32>
      %306 = arith.mulf %305, %305 : vector<32x128xf32>
      %307 = arith.mulf %304, %300 : vector<32x128xf32>
      %308 = arith.addi %5, %298 : i32
      %309 = tpu.iota {dimensions = array<i32: 0>} : vector<32x1xi32>
      %310 = vector.broadcast %308 : i32 to vector<32x1xi32>
      %311 = arith.addi %310, %309 : vector<32x1xi32>
      %c200_i32_102 = arith.constant 200 : i32
      %312 = vector.broadcast %c200_i32_102 : i32 to vector<32x1xi32>
      %313 = arith.cmpi slt, %311, %312 : vector<32x1xi32>
      %cst_103 = arith.constant 0.000000e+00 : f32
      %314 = vector.shape_cast %313 : vector<32x1xi1> to vector<32x1xi1>
      %315 = vector.broadcast %314 : vector<32x1xi1> to vector<32x128xi1>
      %316 = vector.broadcast %cst_103 : f32 to vector<32x128xf32>
      %317 = arith.select %315, %306, %316 : vector<32x128xi1>, vector<32x128xf32>
      %cst_104 = arith.constant 0.000000e+00 : f32
      %318 = vector.shape_cast %313 : vector<32x1xi1> to vector<32x1xi1>
      %319 = vector.broadcast %318 : vector<32x1xi1> to vector<32x128xi1>
      %320 = vector.broadcast %cst_104 : f32 to vector<32x128xf32>
      %321 = arith.select %319, %307, %320 : vector<32x128xi1>, vector<32x128xf32>
      %322 = arith.addf %295, %317 : vector<32x128xf32>
      %323 = arith.addf %296, %321 : vector<32x128xf32>
      %c4_i32_105 = arith.constant 4 : i32
      %c32_i32_106 = arith.constant 32 : i32
      %324 = arith.muli %c4_i32_105, %c32_i32_106 : i32
      %325 = tpu.assume_multiple %324, 32 : i32
      %326 = arith.index_cast %325 : i32 to index
      %c0_107 = arith.constant 0 : index
      %327 = vector.load %arg5[%326, %c0_107] : memref<224x128xf32, #tpu.memory_space<vmem>>, vector<32x128xf32>
      %328 = arith.index_cast %325 : i32 to index
      %c0_108 = arith.constant 0 : index
      %329 = vector.load %arg6[%328, %c0_108] : memref<224x128xf32, #tpu.memory_space<vmem>>, vector<32x128xf32>
      %330 = arith.index_cast %325 : i32 to index
      %c0_109 = arith.constant 0 : index
      %331 = vector.load %arg7[%330, %c0_109] : memref<224x128xf32, #tpu.memory_space<vmem>>, vector<32x128xf32>
      %332 = arith.subf %329, %327 : vector<32x128xf32>
      %333 = arith.mulf %332, %332 : vector<32x128xf32>
      %334 = arith.mulf %331, %327 : vector<32x128xf32>
      %335 = arith.addi %5, %325 : i32
      %336 = tpu.iota {dimensions = array<i32: 0>} : vector<32x1xi32>
      %337 = vector.broadcast %335 : i32 to vector<32x1xi32>
      %338 = arith.addi %337, %336 : vector<32x1xi32>
      %c200_i32_110 = arith.constant 200 : i32
      %339 = vector.broadcast %c200_i32_110 : i32 to vector<32x1xi32>
      %340 = arith.cmpi slt, %338, %339 : vector<32x1xi32>
      %cst_111 = arith.constant 0.000000e+00 : f32
      %341 = vector.shape_cast %340 : vector<32x1xi1> to vector<32x1xi1>
      %342 = vector.broadcast %341 : vector<32x1xi1> to vector<32x128xi1>
      %343 = vector.broadcast %cst_111 : f32 to vector<32x128xf32>
      %344 = arith.select %342, %333, %343 : vector<32x128xi1>, vector<32x128xf32>
      %cst_112 = arith.constant 0.000000e+00 : f32
      %345 = vector.shape_cast %340 : vector<32x1xi1> to vector<32x1xi1>
      %346 = vector.broadcast %345 : vector<32x1xi1> to vector<32x128xi1>
      %347 = vector.broadcast %cst_112 : f32 to vector<32x128xf32>
      %348 = arith.select %346, %334, %347 : vector<32x128xi1>, vector<32x128xf32>
      %349 = arith.addf %322, %344 : vector<32x128xf32>
      %350 = arith.addf %323, %348 : vector<32x128xf32>
      %c5_i32_113 = arith.constant 5 : i32
      %c32_i32_114 = arith.constant 32 : i32
      %351 = arith.muli %c5_i32_113, %c32_i32_114 : i32
      %352 = tpu.assume_multiple %351, 32 : i32
      %353 = arith.index_cast %352 : i32 to index
      %c0_115 = arith.constant 0 : index
      %354 = vector.load %arg5[%353, %c0_115] : memref<224x128xf32, #tpu.memory_space<vmem>>, vector<32x128xf32>
      %355 = arith.index_cast %352 : i32 to index
      %c0_116 = arith.constant 0 : index
      %356 = vector.load %arg6[%355, %c0_116] : memref<224x128xf32, #tpu.memory_space<vmem>>, vector<32x128xf32>
      %357 = arith.index_cast %352 : i32 to index
      %c0_117 = arith.constant 0 : index
      %358 = vector.load %arg7[%357, %c0_117] : memref<224x128xf32, #tpu.memory_space<vmem>>, vector<32x128xf32>
      %359 = arith.subf %356, %354 : vector<32x128xf32>
      %360 = arith.mulf %359, %359 : vector<32x128xf32>
      %361 = arith.mulf %358, %354 : vector<32x128xf32>
      %362 = arith.addi %5, %352 : i32
      %363 = tpu.iota {dimensions = array<i32: 0>} : vector<32x1xi32>
      %364 = vector.broadcast %362 : i32 to vector<32x1xi32>
      %365 = arith.addi %364, %363 : vector<32x1xi32>
      %c200_i32_118 = arith.constant 200 : i32
      %366 = vector.broadcast %c200_i32_118 : i32 to vector<32x1xi32>
      %367 = arith.cmpi slt, %365, %366 : vector<32x1xi32>
      %cst_119 = arith.constant 0.000000e+00 : f32
      %368 = vector.shape_cast %367 : vector<32x1xi1> to vector<32x1xi1>
      %369 = vector.broadcast %368 : vector<32x1xi1> to vector<32x128xi1>
      %370 = vector.broadcast %cst_119 : f32 to vector<32x128xf32>
      %371 = arith.select %369, %360, %370 : vector<32x128xi1>, vector<32x128xf32>
      %cst_120 = arith.constant 0.000000e+00 : f32
      %372 = vector.shape_cast %367 : vector<32x1xi1> to vector<32x1xi1>
      %373 = vector.broadcast %372 : vector<32x1xi1> to vector<32x128xi1>
      %374 = vector.broadcast %cst_120 : f32 to vector<32x128xf32>
      %375 = arith.select %373, %361, %374 : vector<32x128xi1>, vector<32x128xf32>
      %376 = arith.addf %349, %371 : vector<32x128xf32>
      %377 = arith.addf %350, %375 : vector<32x128xf32>
      %c6_i32_121 = arith.constant 6 : i32
      %c32_i32_122 = arith.constant 32 : i32
      %378 = arith.muli %c6_i32_121, %c32_i32_122 : i32
      %379 = tpu.assume_multiple %378, 32 : i32
      %380 = arith.index_cast %379 : i32 to index
      %c0_123 = arith.constant 0 : index
      %381 = vector.load %arg5[%380, %c0_123] : memref<224x128xf32, #tpu.memory_space<vmem>>, vector<32x128xf32>
      %382 = arith.index_cast %379 : i32 to index
      %c0_124 = arith.constant 0 : index
      %383 = vector.load %arg6[%382, %c0_124] : memref<224x128xf32, #tpu.memory_space<vmem>>, vector<32x128xf32>
      %384 = arith.index_cast %379 : i32 to index
      %c0_125 = arith.constant 0 : index
      %385 = vector.load %arg7[%384, %c0_125] : memref<224x128xf32, #tpu.memory_space<vmem>>, vector<32x128xf32>
      %386 = arith.subf %383, %381 : vector<32x128xf32>
      %387 = arith.mulf %386, %386 : vector<32x128xf32>
      %388 = arith.mulf %385, %381 : vector<32x128xf32>
      %389 = arith.addi %5, %379 : i32
      %390 = tpu.iota {dimensions = array<i32: 0>} : vector<32x1xi32>
      %391 = vector.broadcast %389 : i32 to vector<32x1xi32>
      %392 = arith.addi %391, %390 : vector<32x1xi32>
      %c200_i32_126 = arith.constant 200 : i32
      %393 = vector.broadcast %c200_i32_126 : i32 to vector<32x1xi32>
      %394 = arith.cmpi slt, %392, %393 : vector<32x1xi32>
      %cst_127 = arith.constant 0.000000e+00 : f32
      %395 = vector.shape_cast %394 : vector<32x1xi1> to vector<32x1xi1>
      %396 = vector.broadcast %395 : vector<32x1xi1> to vector<32x128xi1>
      %397 = vector.broadcast %cst_127 : f32 to vector<32x128xf32>
      %398 = arith.select %396, %387, %397 : vector<32x128xi1>, vector<32x128xf32>
      %cst_128 = arith.constant 0.000000e+00 : f32
      %399 = vector.shape_cast %394 : vector<32x1xi1> to vector<32x1xi1>
      %400 = vector.broadcast %399 : vector<32x1xi1> to vector<32x128xi1>
      %401 = vector.broadcast %cst_128 : f32 to vector<32x128xf32>
      %402 = arith.select %400, %388, %401 : vector<32x128xi1>, vector<32x128xf32>
      %403 = arith.addf %376, %398 : vector<32x128xf32>
      %404 = arith.addf %377, %402 : vector<32x128xf32>
      %c7_i32_129 = arith.constant 7 : i32
      %c0_130 = arith.constant 0 : index
      %c1_131 = arith.constant 1 : index
      %c0_132 = arith.constant 0 : index
      %c0_133 = arith.constant 0 : index
      %c0_134 = arith.constant 0 : index
      %405 = vector.load %arg8[%c0_130, %c1_131, %c0_132, %c0_133, %c0_134] : memref<1x2x2x32x128xf32, #tpu.memory_space<vmem>>, vector<1x1x1x32x128xf32>
      %406 = vector.shape_cast %405 : vector<1x1x1x32x128xf32> to vector<32x128xf32>
      %407 = arith.addf %406, %403 : vector<32x128xf32>
      %c0_135 = arith.constant 0 : index
      %c1_136 = arith.constant 1 : index
      %c0_137 = arith.constant 0 : index
      %c0_138 = arith.constant 0 : index
      %c0_139 = arith.constant 0 : index
      %408 = vector.load %arg8[%c0_135, %c1_136, %c0_137, %c0_138, %c0_139] : memref<1x2x2x32x128xf32, #tpu.memory_space<vmem>>, vector<1x1x1x32x128xf32>
      %409 = vector.shape_cast %408 : vector<1x1x1x32x128xf32> to vector<32x128xf32>
      %410 = vector.shape_cast %407 : vector<32x128xf32> to vector<1x1x1x32x128xf32>
      tpu.vector_store %arg8[%c0_135, %c1_136, %c0_137, %c0_138, %c0_139], %410 {strides = array<i32>} : memref<1x2x2x32x128xf32, #tpu.memory_space<vmem>>, vector<1x1x1x32x128xf32>,
      %c0_140 = arith.constant 0 : index
      %c1_141 = arith.constant 1 : index
      %c1_142 = arith.constant 1 : index
      %c0_143 = arith.constant 0 : index
      %c0_144 = arith.constant 0 : index
      %411 = vector.load %arg8[%c0_140, %c1_141, %c1_142, %c0_143, %c0_144] : memref<1x2x2x32x128xf32, #tpu.memory_space<vmem>>, vector<1x1x1x32x128xf32>
      %412 = vector.shape_cast %411 : vector<1x1x1x32x128xf32> to vector<32x128xf32>
      %413 = arith.addf %412, %404 : vector<32x128xf32>
      %c0_145 = arith.constant 0 : index
      %c1_146 = arith.constant 1 : index
      %c1_147 = arith.constant 1 : index
      %c0_148 = arith.constant 0 : index
      %c0_149 = arith.constant 0 : index
      %414 = vector.load %arg8[%c0_145, %c1_146, %c1_147, %c0_148, %c0_149] : memref<1x2x2x32x128xf32, #tpu.memory_space<vmem>>, vector<1x1x1x32x128xf32>
      %415 = vector.shape_cast %414 : vector<1x1x1x32x128xf32> to vector<32x128xf32>
      %416 = vector.shape_cast %413 : vector<32x128xf32> to vector<1x1x1x32x128xf32>
      tpu.vector_store %arg8[%c0_145, %c1_146, %c1_147, %c0_148, %c0_149], %416 {strides = array<i32>} : memref<1x2x2x32x128xf32, #tpu.memory_space<vmem>>, vector<1x1x1x32x128xf32>,
    } else {
    }
    %true = arith.constant true
    %10 = arith.xori %7, %true : i1
    %11 = arith.extui %10 : i1 to i32
    %c0_i32_3 = arith.constant 0 : i32
    %12 = arith.cmpi ne, %11, %c0_i32_3 : i32
    scf.if %12 {
      %cst = arith.constant 0.000000e+00 : f32
      %13 = vector.broadcast %cst : f32 to vector<32x128xf32>
      %c0_i32_4 = arith.constant 0 : i32
      %c32_i32 = arith.constant 32 : i32
      %14 = arith.muli %c0_i32_4, %c32_i32 : i32
      %15 = tpu.assume_multiple %14, 32 : i32
      %16 = arith.index_cast %15 : i32 to index
      %c0 = arith.constant 0 : index
      %17 = vector.load %arg2[%16, %c0] : memref<224x128xf32, #tpu.memory_space<vmem>>, vector<32x128xf32>
      %18 = arith.index_cast %15 : i32 to index
      %c0_5 = arith.constant 0 : index
      %19 = vector.load %arg3[%18, %c0_5] : memref<224x128xf32, #tpu.memory_space<vmem>>, vector<32x128xf32>
      %20 = arith.index_cast %15 : i32 to index
      %c0_6 = arith.constant 0 : index
      %21 = vector.load %arg4[%20, %c0_6] : memref<224x128xf32, #tpu.memory_space<vmem>>, vector<32x128xf32>
      %22 = arith.subf %19, %17 : vector<32x128xf32>
      %23 = arith.mulf %22, %22 : vector<32x128xf32>
      %24 = arith.mulf %21, %17 : vector<32x128xf32>
      %25 = arith.addf %13, %23 : vector<32x128xf32>
      %26 = arith.addf %13, %24 : vector<32x128xf32>
      %c1_i32_7 = arith.constant 1 : i32
      %c32_i32_8 = arith.constant 32 : i32
      %27 = arith.muli %c1_i32_7, %c32_i32_8 : i32
      %28 = tpu.assume_multiple %27, 32 : i32
      %29 = arith.index_cast %28 : i32 to index
      %c0_9 = arith.constant 0 : index
      %30 = vector.load %arg2[%29, %c0_9] : memref<224x128xf32, #tpu.memory_space<vmem>>, vector<32x128xf32>
      %31 = arith.index_cast %28 : i32 to index
      %c0_10 = arith.constant 0 : index
      %32 = vector.load %arg3[%31, %c0_10] : memref<224x128xf32, #tpu.memory_space<vmem>>, vector<32x128xf32>
      %33 = arith.index_cast %28 : i32 to index
      %c0_11 = arith.constant 0 : index
      %34 = vector.load %arg4[%33, %c0_11] : memref<224x128xf32, #tpu.memory_space<vmem>>, vector<32x128xf32>
      %35 = arith.subf %32, %30 : vector<32x128xf32>
      %36 = arith.mulf %35, %35 : vector<32x128xf32>
      %37 = arith.mulf %34, %30 : vector<32x128xf32>
      %38 = arith.addf %25, %36 : vector<32x128xf32>
      %39 = arith.addf %26, %37 : vector<32x128xf32>
      %c2_i32 = arith.constant 2 : i32
      %c32_i32_12 = arith.constant 32 : i32
      %40 = arith.muli %c2_i32, %c32_i32_12 : i32
      %41 = tpu.assume_multiple %40, 32 : i32
      %42 = arith.index_cast %41 : i32 to index
      %c0_13 = arith.constant 0 : index
      %43 = vector.load %arg2[%42, %c0_13] : memref<224x128xf32, #tpu.memory_space<vmem>>, vector<32x128xf32>
      %44 = arith.index_cast %41 : i32 to index
      %c0_14 = arith.constant 0 : index
      %45 = vector.load %arg3[%44, %c0_14] : memref<224x128xf32, #tpu.memory_space<vmem>>, vector<32x128xf32>
      %46 = arith.index_cast %41 : i32 to index
      %c0_15 = arith.constant 0 : index
      %47 = vector.load %arg4[%46, %c0_15] : memref<224x128xf32, #tpu.memory_space<vmem>>, vector<32x128xf32>
      %48 = arith.subf %45, %43 : vector<32x128xf32>
      %49 = arith.mulf %48, %48 : vector<32x128xf32>
      %50 = arith.mulf %47, %43 : vector<32x128xf32>
      %51 = arith.addf %38, %49 : vector<32x128xf32>
      %52 = arith.addf %39, %50 : vector<32x128xf32>
      %c3_i32 = arith.constant 3 : i32
      %c32_i32_16 = arith.constant 32 : i32
      %53 = arith.muli %c3_i32, %c32_i32_16 : i32
      %54 = tpu.assume_multiple %53, 32 : i32
      %55 = arith.index_cast %54 : i32 to index
      %c0_17 = arith.constant 0 : index
      %56 = vector.load %arg2[%55, %c0_17] : memref<224x128xf32, #tpu.memory_space<vmem>>, vector<32x128xf32>
      %57 = arith.index_cast %54 : i32 to index
      %c0_18 = arith.constant 0 : index
      %58 = vector.load %arg3[%57, %c0_18] : memref<224x128xf32, #tpu.memory_space<vmem>>, vector<32x128xf32>
      %59 = arith.index_cast %54 : i32 to index
      %c0_19 = arith.constant 0 : index
      %60 = vector.load %arg4[%59, %c0_19] : memref<224x128xf32, #tpu.memory_space<vmem>>, vector<32x128xf32>
      %61 = arith.subf %58, %56 : vector<32x128xf32>
      %62 = arith.mulf %61, %61 : vector<32x128xf32>
      %63 = arith.mulf %60, %56 : vector<32x128xf32>
      %64 = arith.addf %51, %62 : vector<32x128xf32>
      %65 = arith.addf %52, %63 : vector<32x128xf32>
      %c4_i32 = arith.constant 4 : i32
      %c32_i32_20 = arith.constant 32 : i32
      %66 = arith.muli %c4_i32, %c32_i32_20 : i32
      %67 = tpu.assume_multiple %66, 32 : i32
      %68 = arith.index_cast %67 : i32 to index
      %c0_21 = arith.constant 0 : index
      %69 = vector.load %arg2[%68, %c0_21] : memref<224x128xf32, #tpu.memory_space<vmem>>, vector<32x128xf32>
      %70 = arith.index_cast %67 : i32 to index
      %c0_22 = arith.constant 0 : index
      %71 = vector.load %arg3[%70, %c0_22] : memref<224x128xf32, #tpu.memory_space<vmem>>, vector<32x128xf32>
      %72 = arith.index_cast %67 : i32 to index
      %c0_23 = arith.constant 0 : index
      %73 = vector.load %arg4[%72, %c0_23] : memref<224x128xf32, #tpu.memory_space<vmem>>, vector<32x128xf32>
      %74 = arith.subf %71, %69 : vector<32x128xf32>
      %75 = arith.mulf %74, %74 : vector<32x128xf32>
      %76 = arith.mulf %73, %69 : vector<32x128xf32>
      %77 = arith.addf %64, %75 : vector<32x128xf32>
      %78 = arith.addf %65, %76 : vector<32x128xf32>
      %c5_i32 = arith.constant 5 : i32
      %c32_i32_24 = arith.constant 32 : i32
      %79 = arith.muli %c5_i32, %c32_i32_24 : i32
      %80 = tpu.assume_multiple %79, 32 : i32
      %81 = arith.index_cast %80 : i32 to index
      %c0_25 = arith.constant 0 : index
      %82 = vector.load %arg2[%81, %c0_25] : memref<224x128xf32, #tpu.memory_space<vmem>>, vector<32x128xf32>
      %83 = arith.index_cast %80 : i32 to index
      %c0_26 = arith.constant 0 : index
      %84 = vector.load %arg3[%83, %c0_26] : memref<224x128xf32, #tpu.memory_space<vmem>>, vector<32x128xf32>
      %85 = arith.index_cast %80 : i32 to index
      %c0_27 = arith.constant 0 : index
      %86 = vector.load %arg4[%85, %c0_27] : memref<224x128xf32, #tpu.memory_space<vmem>>, vector<32x128xf32>
      %87 = arith.subf %84, %82 : vector<32x128xf32>
      %88 = arith.mulf %87, %87 : vector<32x128xf32>
      %89 = arith.mulf %86, %82 : vector<32x128xf32>
      %90 = arith.addf %77, %88 : vector<32x128xf32>
      %91 = arith.addf %78, %89 : vector<32x128xf32>
      %c6_i32 = arith.constant 6 : i32
      %c32_i32_28 = arith.constant 32 : i32
      %92 = arith.muli %c6_i32, %c32_i32_28 : i32
      %93 = tpu.assume_multiple %92, 32 : i32
      %94 = arith.index_cast %93 : i32 to index
      %c0_29 = arith.constant 0 : index
      %95 = vector.load %arg2[%94, %c0_29] : memref<224x128xf32, #tpu.memory_space<vmem>>, vector<32x128xf32>
      %96 = arith.index_cast %93 : i32 to index
      %c0_30 = arith.constant 0 : index
      %97 = vector.load %arg3[%96, %c0_30] : memref<224x128xf32, #tpu.memory_space<vmem>>, vector<32x128xf32>
      %98 = arith.index_cast %93 : i32 to index
      %c0_31 = arith.constant 0 : index
      %99 = vector.load %arg4[%98, %c0_31] : memref<224x128xf32, #tpu.memory_space<vmem>>, vector<32x128xf32>
      %100 = arith.subf %97, %95 : vector<32x128xf32>
      %101 = arith.mulf %100, %100 : vector<32x128xf32>
      %102 = arith.mulf %99, %95 : vector<32x128xf32>
      %103 = arith.addf %90, %101 : vector<32x128xf32>
      %104 = arith.addf %91, %102 : vector<32x128xf32>
      %c7_i32 = arith.constant 7 : i32
      %c0_32 = arith.constant 0 : index
      %c0_33 = arith.constant 0 : index
      %c0_34 = arith.constant 0 : index
      %c0_35 = arith.constant 0 : index
      %c0_36 = arith.constant 0 : index
      %105 = vector.load %arg8[%c0_32, %c0_33, %c0_34, %c0_35, %c0_36] : memref<1x2x2x32x128xf32, #tpu.memory_space<vmem>>, vector<1x1x1x32x128xf32>
      %106 = vector.shape_cast %105 : vector<1x1x1x32x128xf32> to vector<32x128xf32>
      %107 = arith.addf %106, %103 : vector<32x128xf32>
      %c0_37 = arith.constant 0 : index
      %c0_38 = arith.constant 0 : index
      %c0_39 = arith.constant 0 : index
      %c0_40 = arith.constant 0 : index
      %c0_41 = arith.constant 0 : index
      %108 = vector.load %arg8[%c0_37, %c0_38, %c0_39, %c0_40, %c0_41] : memref<1x2x2x32x128xf32, #tpu.memory_space<vmem>>, vector<1x1x1x32x128xf32>
      %109 = vector.shape_cast %108 : vector<1x1x1x32x128xf32> to vector<32x128xf32>
      %110 = vector.shape_cast %107 : vector<32x128xf32> to vector<1x1x1x32x128xf32>
      tpu.vector_store %arg8[%c0_37, %c0_38, %c0_39, %c0_40, %c0_41], %110 {strides = array<i32>} : memref<1x2x2x32x128xf32, #tpu.memory_space<vmem>>, vector<1x1x1x32x128xf32>,
      %c0_42 = arith.constant 0 : index
      %c0_43 = arith.constant 0 : index
      %c1 = arith.constant 1 : index
      %c0_44 = arith.constant 0 : index
      %c0_45 = arith.constant 0 : index
      %111 = vector.load %arg8[%c0_42, %c0_43, %c1, %c0_44, %c0_45] : memref<1x2x2x32x128xf32, #tpu.memory_space<vmem>>, vector<1x1x1x32x128xf32>
      %112 = vector.shape_cast %111 : vector<1x1x1x32x128xf32> to vector<32x128xf32>
      %113 = arith.addf %112, %104 : vector<32x128xf32>
      %c0_46 = arith.constant 0 : index
      %c0_47 = arith.constant 0 : index
      %c1_48 = arith.constant 1 : index
      %c0_49 = arith.constant 0 : index
      %c0_50 = arith.constant 0 : index
      %114 = vector.load %arg8[%c0_46, %c0_47, %c1_48, %c0_49, %c0_50] : memref<1x2x2x32x128xf32, #tpu.memory_space<vmem>>, vector<1x1x1x32x128xf32>
      %115 = vector.shape_cast %114 : vector<1x1x1x32x128xf32> to vector<32x128xf32>
      %116 = vector.shape_cast %113 : vector<32x128xf32> to vector<1x1x1x32x128xf32>
      tpu.vector_store %arg8[%c0_46, %c0_47, %c1_48, %c0_49, %c0_50], %116 {strides = array<i32>} : memref<1x2x2x32x128xf32, #tpu.memory_space<vmem>>, vector<1x1x1x32x128xf32>,
      %cst_51 = arith.constant 0.000000e+00 : f32
      %117 = vector.broadcast %cst_51 : f32 to vector<32x128xf32>
      %c0_i32_52 = arith.constant 0 : i32
      %c32_i32_53 = arith.constant 32 : i32
      %118 = arith.muli %c0_i32_52, %c32_i32_53 : i32
      %119 = tpu.assume_multiple %118, 32 : i32
      %120 = arith.index_cast %119 : i32 to index
      %c0_54 = arith.constant 0 : index
      %121 = vector.load %arg5[%120, %c0_54] : memref<224x128xf32, #tpu.memory_space<vmem>>, vector<32x128xf32>
      %122 = arith.index_cast %119 : i32 to index
      %c0_55 = arith.constant 0 : index
      %123 = vector.load %arg6[%122, %c0_55] : memref<224x128xf32, #tpu.memory_space<vmem>>, vector<32x128xf32>
      %124 = arith.index_cast %119 : i32 to index
      %c0_56 = arith.constant 0 : index
      %125 = vector.load %arg7[%124, %c0_56] : memref<224x128xf32, #tpu.memory_space<vmem>>, vector<32x128xf32>
      %126 = arith.subf %123, %121 : vector<32x128xf32>
      %127 = arith.mulf %126, %126 : vector<32x128xf32>
      %128 = arith.mulf %125, %121 : vector<32x128xf32>
      %129 = arith.addf %117, %127 : vector<32x128xf32>
      %130 = arith.addf %117, %128 : vector<32x128xf32>
      %c1_i32_57 = arith.constant 1 : i32
      %c32_i32_58 = arith.constant 32 : i32
      %131 = arith.muli %c1_i32_57, %c32_i32_58 : i32
      %132 = tpu.assume_multiple %131, 32 : i32
      %133 = arith.index_cast %132 : i32 to index
      %c0_59 = arith.constant 0 : index
      %134 = vector.load %arg5[%133, %c0_59] : memref<224x128xf32, #tpu.memory_space<vmem>>, vector<32x128xf32>
      %135 = arith.index_cast %132 : i32 to index
      %c0_60 = arith.constant 0 : index
      %136 = vector.load %arg6[%135, %c0_60] : memref<224x128xf32, #tpu.memory_space<vmem>>, vector<32x128xf32>
      %137 = arith.index_cast %132 : i32 to index
      %c0_61 = arith.constant 0 : index
      %138 = vector.load %arg7[%137, %c0_61] : memref<224x128xf32, #tpu.memory_space<vmem>>, vector<32x128xf32>
      %139 = arith.subf %136, %134 : vector<32x128xf32>
      %140 = arith.mulf %139, %139 : vector<32x128xf32>
      %141 = arith.mulf %138, %134 : vector<32x128xf32>
      %142 = arith.addf %129, %140 : vector<32x128xf32>
      %143 = arith.addf %130, %141 : vector<32x128xf32>
      %c2_i32_62 = arith.constant 2 : i32
      %c32_i32_63 = arith.constant 32 : i32
      %144 = arith.muli %c2_i32_62, %c32_i32_63 : i32
      %145 = tpu.assume_multiple %144, 32 : i32
      %146 = arith.index_cast %145 : i32 to index
      %c0_64 = arith.constant 0 : index
      %147 = vector.load %arg5[%146, %c0_64] : memref<224x128xf32, #tpu.memory_space<vmem>>, vector<32x128xf32>
      %148 = arith.index_cast %145 : i32 to index
      %c0_65 = arith.constant 0 : index
      %149 = vector.load %arg6[%148, %c0_65] : memref<224x128xf32, #tpu.memory_space<vmem>>, vector<32x128xf32>
      %150 = arith.index_cast %145 : i32 to index
      %c0_66 = arith.constant 0 : index
      %151 = vector.load %arg7[%150, %c0_66] : memref<224x128xf32, #tpu.memory_space<vmem>>, vector<32x128xf32>
      %152 = arith.subf %149, %147 : vector<32x128xf32>
      %153 = arith.mulf %152, %152 : vector<32x128xf32>
      %154 = arith.mulf %151, %147 : vector<32x128xf32>
      %155 = arith.addf %142, %153 : vector<32x128xf32>
      %156 = arith.addf %143, %154 : vector<32x128xf32>
      %c3_i32_67 = arith.constant 3 : i32
      %c32_i32_68 = arith.constant 32 : i32
      %157 = arith.muli %c3_i32_67, %c32_i32_68 : i32
      %158 = tpu.assume_multiple %157, 32 : i32
      %159 = arith.index_cast %158 : i32 to index
      %c0_69 = arith.constant 0 : index
      %160 = vector.load %arg5[%159, %c0_69] : memref<224x128xf32, #tpu.memory_space<vmem>>, vector<32x128xf32>
      %161 = arith.index_cast %158 : i32 to index
      %c0_70 = arith.constant 0 : index
      %162 = vector.load %arg6[%161, %c0_70] : memref<224x128xf32, #tpu.memory_space<vmem>>, vector<32x128xf32>
      %163 = arith.index_cast %158 : i32 to index
      %c0_71 = arith.constant 0 : index
      %164 = vector.load %arg7[%163, %c0_71] : memref<224x128xf32, #tpu.memory_space<vmem>>, vector<32x128xf32>
      %165 = arith.subf %162, %160 : vector<32x128xf32>
      %166 = arith.mulf %165, %165 : vector<32x128xf32>
      %167 = arith.mulf %164, %160 : vector<32x128xf32>
      %168 = arith.addf %155, %166 : vector<32x128xf32>
      %169 = arith.addf %156, %167 : vector<32x128xf32>
      %c4_i32_72 = arith.constant 4 : i32
      %c32_i32_73 = arith.constant 32 : i32
      %170 = arith.muli %c4_i32_72, %c32_i32_73 : i32
      %171 = tpu.assume_multiple %170, 32 : i32
      %172 = arith.index_cast %171 : i32 to index
      %c0_74 = arith.constant 0 : index
      %173 = vector.load %arg5[%172, %c0_74] : memref<224x128xf32, #tpu.memory_space<vmem>>, vector<32x128xf32>
      %174 = arith.index_cast %171 : i32 to index
      %c0_75 = arith.constant 0 : index
      %175 = vector.load %arg6[%174, %c0_75] : memref<224x128xf32, #tpu.memory_space<vmem>>, vector<32x128xf32>
      %176 = arith.index_cast %171 : i32 to index
      %c0_76 = arith.constant 0 : index
      %177 = vector.load %arg7[%176, %c0_76] : memref<224x128xf32, #tpu.memory_space<vmem>>, vector<32x128xf32>
      %178 = arith.subf %175, %173 : vector<32x128xf32>
      %179 = arith.mulf %178, %178 : vector<32x128xf32>
      %180 = arith.mulf %177, %173 : vector<32x128xf32>
      %181 = arith.addf %168, %179 : vector<32x128xf32>
      %182 = arith.addf %169, %180 : vector<32x128xf32>
      %c5_i32_77 = arith.constant 5 : i32
      %c32_i32_78 = arith.constant 32 : i32
      %183 = arith.muli %c5_i32_77, %c32_i32_78 : i32
      %184 = tpu.assume_multiple %183, 32 : i32
      %185 = arith.index_cast %184 : i32 to index
      %c0_79 = arith.constant 0 : index
      %186 = vector.load %arg5[%185, %c0_79] : memref<224x128xf32, #tpu.memory_space<vmem>>, vector<32x128xf32>
      %187 = arith.index_cast %184 : i32 to index
      %c0_80 = arith.constant 0 : index
      %188 = vector.load %arg6[%187, %c0_80] : memref<224x128xf32, #tpu.memory_space<vmem>>, vector<32x128xf32>
      %189 = arith.index_cast %184 : i32 to index
      %c0_81 = arith.constant 0 : index
      %190 = vector.load %arg7[%189, %c0_81] : memref<224x128xf32, #tpu.memory_space<vmem>>, vector<32x128xf32>
      %191 = arith.subf %188, %186 : vector<32x128xf32>
      %192 = arith.mulf %191, %191 : vector<32x128xf32>
      %193 = arith.mulf %190, %186 : vector<32x128xf32>
      %194 = arith.addf %181, %192 : vector<32x128xf32>
      %195 = arith.addf %182, %193 : vector<32x128xf32>
      %c6_i32_82 = arith.constant 6 : i32
      %c32_i32_83 = arith.constant 32 : i32
      %196 = arith.muli %c6_i32_82, %c32_i32_83 : i32
      %197 = tpu.assume_multiple %196, 32 : i32
      %198 = arith.index_cast %197 : i32 to index
      %c0_84 = arith.constant 0 : index
      %199 = vector.load %arg5[%198, %c0_84] : memref<224x128xf32, #tpu.memory_space<vmem>>, vector<32x128xf32>
      %200 = arith.index_cast %197 : i32 to index
      %c0_85 = arith.constant 0 : index
      %201 = vector.load %arg6[%200, %c0_85] : memref<224x128xf32, #tpu.memory_space<vmem>>, vector<32x128xf32>
      %202 = arith.index_cast %197 : i32 to index
      %c0_86 = arith.constant 0 : index
      %203 = vector.load %arg7[%202, %c0_86] : memref<224x128xf32, #tpu.memory_space<vmem>>, vector<32x128xf32>
      %204 = arith.subf %201, %199 : vector<32x128xf32>
      %205 = arith.mulf %204, %204 : vector<32x128xf32>
      %206 = arith.mulf %203, %199 : vector<32x128xf32>
      %207 = arith.addf %194, %205 : vector<32x128xf32>
      %208 = arith.addf %195, %206 : vector<32x128xf32>
      %c7_i32_87 = arith.constant 7 : i32
      %c0_88 = arith.constant 0 : index
      %c1_89 = arith.constant 1 : index
      %c0_90 = arith.constant 0 : index
      %c0_91 = arith.constant 0 : index
      %c0_92 = arith.constant 0 : index
      %209 = vector.load %arg8[%c0_88, %c1_89, %c0_90, %c0_91, %c0_92] : memref<1x2x2x32x128xf32, #tpu.memory_space<vmem>>, vector<1x1x1x32x128xf32>
      %210 = vector.shape_cast %209 : vector<1x1x1x32x128xf32> to vector<32x128xf32>
      %211 = arith.addf %210, %207 : vector<32x128xf32>
      %c0_93 = arith.constant 0 : index
      %c1_94 = arith.constant 1 : index
      %c0_95 = arith.constant 0 : index
      %c0_96 = arith.constant 0 : index
      %c0_97 = arith.constant 0 : index
      %212 = vector.load %arg8[%c0_93, %c1_94, %c0_95, %c0_96, %c0_97] : memref<1x2x2x32x128xf32, #tpu.memory_space<vmem>>, vector<1x1x1x32x128xf32>
      %213 = vector.shape_cast %212 : vector<1x1x1x32x128xf32> to vector<32x128xf32>
      %214 = vector.shape_cast %211 : vector<32x128xf32> to vector<1x1x1x32x128xf32>
      tpu.vector_store %arg8[%c0_93, %c1_94, %c0_95, %c0_96, %c0_97], %214 {strides = array<i32>} : memref<1x2x2x32x128xf32, #tpu.memory_space<vmem>>, vector<1x1x1x32x128xf32>,
      %c0_98 = arith.constant 0 : index
      %c1_99 = arith.constant 1 : index
      %c1_100 = arith.constant 1 : index
      %c0_101 = arith.constant 0 : index
      %c0_102 = arith.constant 0 : index
      %215 = vector.load %arg8[%c0_98, %c1_99, %c1_100, %c0_101, %c0_102] : memref<1x2x2x32x128xf32, #tpu.memory_space<vmem>>, vector<1x1x1x32x128xf32>
      %216 = vector.shape_cast %215 : vector<1x1x1x32x128xf32> to vector<32x128xf32>
      %217 = arith.addf %216, %208 : vector<32x128xf32>
      %c0_103 = arith.constant 0 : index
      %c1_104 = arith.constant 1 : index
      %c1_105 = arith.constant 1 : index
      %c0_106 = arith.constant 0 : index
      %c0_107 = arith.constant 0 : index
      %218 = vector.load %arg8[%c0_103, %c1_104, %c1_105, %c0_106, %c0_107] : memref<1x2x2x32x128xf32, #tpu.memory_space<vmem>>, vector<1x1x1x32x128xf32>
      %219 = vector.shape_cast %218 : vector<1x1x1x32x128xf32> to vector<32x128xf32>
      %220 = vector.shape_cast %217 : vector<32x128xf32> to vector<1x1x1x32x128xf32>
      tpu.vector_store %arg8[%c0_103, %c1_104, %c1_105, %c0_106, %c0_107], %220 {strides = array<i32>} : memref<1x2x2x32x128xf32, #tpu.memory_space<vmem>>, vector<1x1x1x32x128xf32>,
    } else {
    }
    return
  }
  func.func @transform_0(%arg0: i32, %arg1: i32) -> (i32, i32) {
    %c1_i32 = arith.constant 1 : i32
    %0 = arith.muli %arg0, %c1_i32 : i32
    %1 = arith.addi %0, %arg1 : i32
    %c0_i32 = arith.constant 0 : i32
    %2 = arith.minsi %1, %c0_i32 : i32
    %c0_i32_0 = arith.constant 0 : i32
    %c0_i32_1 = arith.constant 0 : i32
    return %2, %c0_i32_0 : i32, i32
  }
  func.func @transform_1(%arg0: i32, %arg1: i32) -> (i32, i32) {
    %c1_i32 = arith.constant 1 : i32
    %0 = arith.muli %arg0, %c1_i32 : i32
    %1 = arith.addi %0, %arg1 : i32
    %c0_i32 = arith.constant 0 : i32
    %2 = arith.minsi %1, %c0_i32 : i32
    %c0_i32_0 = arith.constant 0 : i32
    %c0_i32_1 = arith.constant 0 : i32
    return %2, %c0_i32_0 : i32, i32
  }
  func.func @transform_2(%arg0: i32, %arg1: i32) -> (i32, i32) {
    %c1_i32 = arith.constant 1 : i32
    %0 = arith.muli %arg0, %c1_i32 : i32
    %1 = arith.addi %0, %arg1 : i32
    %c0_i32 = arith.constant 0 : i32
    %2 = arith.minsi %1, %c0_i32 : i32
    %c0_i32_0 = arith.constant 0 : i32
    %c0_i32_1 = arith.constant 0 : i32
    return %2, %c0_i32_0 : i32, i32
  }
  func.func @transform_3(%arg0: i32, %arg1: i32) -> (i32, i32) {
    %c1_i32 = arith.constant 1 : i32
    %0 = arith.muli %arg0, %c1_i32 : i32
    %1 = arith.addi %0, %arg1 : i32
    %c0_i32 = arith.constant 0 : i32
    %2 = arith.minsi %1, %c0_i32 : i32
    %c0_i32_0 = arith.constant 0 : i32
    %c0_i32_1 = arith.constant 0 : i32
    return %2, %c0_i32_0 : i32, i32
  }
  func.func @transform_4(%arg0: i32, %arg1: i32) -> (i32, i32) {
    %c1_i32 = arith.constant 1 : i32
    %0 = arith.muli %arg0, %c1_i32 : i32
    %1 = arith.addi %0, %arg1 : i32
    %c0_i32 = arith.constant 0 : i32
    %2 = arith.minsi %1, %c0_i32 : i32
    %c0_i32_0 = arith.constant 0 : i32
    %c0_i32_1 = arith.constant 0 : i32
    return %2, %c0_i32_0 : i32, i32
  }
  func.func @transform_5(%arg0: i32, %arg1: i32) -> (i32, i32) {
    %c1_i32 = arith.constant 1 : i32
    %0 = arith.muli %arg0, %c1_i32 : i32
    %1 = arith.addi %0, %arg1 : i32
    %c0_i32 = arith.constant 0 : i32
    %2 = arith.minsi %1, %c0_i32 : i32
    %c0_i32_0 = arith.constant 0 : i32
    %c0_i32_1 = arith.constant 0 : i32
    return %2, %c0_i32_0 : i32, i32
  }
  func.func @transform_6(%arg0: i32, %arg1: i32) -> (i32, i32, i32, i32, i32) {
    %c0_i32 = arith.constant 0 : i32
    %c0_i32_0 = arith.constant 0 : i32
    %c0_i32_1 = arith.constant 0 : i32
    %c0_i32_2 = arith.constant 0 : i32
    %c0_i32_3 = arith.constant 0 : i32
    return %arg0, %c0_i32, %c0_i32_0, %c0_i32_1, %c0_i32_2 : i32, i32, i32, i32, i32
  }
}

</mosaic_0001>

<bundles_post_ra>
// kernel: tpu_custom_call.1
= control target key start
LH: loop header
LB: loop body
LE: loop exit
PB: predicated region body
PF: predicated region fallthrough
CT: control target
= control target key end

     0   :  { %11 = vsyncpa [#allocation3], 0  ;;  %s2072_s0 = inlined_call_operand.hbm [shape: f32[200,128], index: 0, kind: input, shape index: {}]   ;;  %s2073_s1 = inlined_call_operand.hbm [shape: f32[200,128], index: 1, kind: input, shape index: {}]   ;;  %s2074_s2 = inlined_call_operand.hbm [shape: f32[200,128], index: 2, kind: input, shape index: {}]   ;;  %s2075_s3 = inlined_call_operand.hbm [shape: f32[200,128], index: 3, kind: input, shape index: {}]   ;;  %s2076_s4 = inlined_call_operand.hbm [shape: f32[200,128], index: 4, kind: input, shape index: {}]   ;;  %s2077_s5 = inlined_call_operand.hbm [shape: f32[200,128], index: 5, kind: input, shape index: {}]   ;;  %s2078_s6 = inlined_call_operand.hbm [shape: f32[1,2,2,32,128], index: 6, kind: output, shape index: {}]  }
   0x1   :  { %12 = vsyncpa [#allocation6], 0 }
   0x2   :  { %13 = vsyncpa [#allocation9], 0 }
   0x3   :  { %14 = vsyncpa [#allocation12], 0 }
   0x4   :  { %15 = vsyncpa [#allocation4], 0 }
   0x5   :  { %26 = vsyncadd [#allocation3], 384  ;;  %s31_s23 = sshll.u32 %s2072_s0, 4  ;;  %s1786_s24 = smov [#allocation2]   ;;  %s32_s23 = int_to_ptr.hbm [resolvable:$true] %s31_s23 }
   0x6   :  { %s33_s25 = sshll.u32 %s1786_s24, 4  ;;  %s1787_s26 = smov 128   ;;  %s34_s25 = int_to_ptr.vmem [resolvable:$true] %s33_s25 }
   0x7   :  { %s1788_s27 = smov 8  }
   0x8   :  { %39 = dma.hbm_to_vmem [thread:$0]  %s32_s23, 3200, %s34_s25, [#allocation3], %s1787_s26, %s1787_s26, %s1788_s27  }
   0x9   :  { %50 = vsyncadd [#allocation6], 384  ;;  %s55_s30 = sshll.u32 %s2073_s1, 4  ;;  %s1789_s7 = smov [#allocation5]   ;;  %s56_s30 = int_to_ptr.hbm [resolvable:$true] %s55_s30 }
   0xa   :  { %s57_s8 = sshll.u32 %s1789_s7, 4  ;;  %s58_s8 = int_to_ptr.vmem [resolvable:$true] %s57_s8 }
   0xb   :  { %63 = dma.hbm_to_vmem [thread:$0]  %s56_s30, 3200, %s58_s8, [#allocation6], %s1787_s26, %s1787_s26, %s1788_s27  }
   0xc   :  { %74 = vsyncadd [#allocation6], 384  ;;  %s79_s10 = sshll.u32 %s2074_s2, 4  ;;  %s1790_s11 = smov [#allocation7]   ;;  %s80_s10 = int_to_ptr.hbm [resolvable:$true] %s79_s10 }
   0xd   :  { %s81_s12 = sshll.u32 %s1790_s11, 4  ;;  %s82_s12 = int_to_ptr.vmem [resolvable:$true] %s81_s12 }
   0xe   :  { %87 = dma.hbm_to_vmem [thread:$0]  %s80_s10, 3200, %s82_s12, [#allocation6], %s1787_s26, %s1787_s26, %s1788_s27  }
   0xf   :  { %98 = vsyncadd [#allocation9], 384  ;;  %s103_s14 = sshll.u32 %s2075_s3, 4  ;;  %s1791_s15 = smov [#allocation8]   ;;  %s104_s14 = int_to_ptr.hbm [resolvable:$true] %s103_s14 }
  0x10   :  { %s105_s16 = sshll.u32 %s1791_s15, 4  ;;  %s106_s16 = int_to_ptr.vmem [resolvable:$true] %s105_s16 }
  0x11   :  { %111 = dma.hbm_to_vmem [thread:$0]  %s104_s14, 3200, %s106_s16, [#allocation9], %s1787_s26, %s1787_s26, %s1788_s27  }
  0x12   :  { %122 = vsyncadd [#allocation9], 384  ;;  %s127_s18 = sshll.u32 %s2076_s4, 4  ;;  %s1792_s19 = smov [#allocation10]   ;;  %s128_s18 = int_to_ptr.hbm [resolvable:$true] %s127_s18 }
  0x13   :  { %s129_s20 = sshll.u32 %s1792_s19, 4  ;;  %s130_s20 = int_to_ptr.vmem [resolvable:$true] %s129_s20 }
  0x14   :  { %135 = dma.hbm_to_vmem [thread:$0]  %s128_s18, 3200, %s130_s20, [#allocation9], %s1787_s26, %s1787_s26, %s1788_s27  }
  0x15   :  { %146 = vsyncadd [#allocation12], 384  ;;  %s151_s22 = sshll.u32 %s2077_s5, 4  ;;  %s1793_s23 = smov [#allocation11]   ;;  %s152_s22 = int_to_ptr.hbm [resolvable:$true] %s151_s22 }
  0x16   :  { %s153_s24 = sshll.u32 %s1793_s23, 4  ;;  %s154_s24 = int_to_ptr.vmem [resolvable:$true] %s153_s24 }
  0x17   :  { %159 = dma.hbm_to_vmem [thread:$0]  %s152_s22, 3200, %s154_s24, [#allocation12], %s1787_s26, %s1787_s26, %s1788_s27  }
  0x18   :  { %1776 = dma.done.wait [#allocation3], 3584  }
  0x19   :  { %1777 = vsyncadd [#allocation3], 4294963712 }
  0x1a   :  { %1778 = dma.done.wait [#allocation6], 7168  }
  0x1b   :  { %1779 = vsyncadd [#allocation6], 4294960128 }
  0x1c   :  { %1780 = dma.done.wait [#allocation9], 7168  }
  0x1d   :  { %1781 = vsyncadd [#allocation9], 4294960128 }
  0x1e   :  { %1782 = dma.done.wait [#allocation12], 3584  }
  0x1f   :  { %1783 = vsyncadd [#allocation12], 4294963712  ;;  %v1866_v0 = vld [vmem:[#allocation2] sm:$0xff]  ;;  %v1885_v22 = vld [vmem:[#allocation2 + $0x8] sm:$0xff]  ;;  %s1794_s4 = smov [#allocation13]   ;;  %s1570_s29 = sshll.u32 %s2078_s6, 4  ;;  %s1571_s29 = int_to_ptr.hbm [resolvable:$true] %s1570_s29 }
  0x20   :  { %v251_v1 = vld [vmem:[#allocation5] sm:$0xff]  ;;  %v252_v24 = vld [vmem:[#allocation5 + $0x8] sm:$0xff]  ;;  %v1904_v46 = vld [vmem:[#allocation2 + $0x10] sm:$0xff]  ;;  %s1568_s5 = sshll.u32 %s1794_s4, 4  ;;  %s1569_s5 = int_to_ptr.vmem [resolvable:$true] %s1568_s5 }
  0x21   :  { %v1868_v2 = vld [vmem:[#allocation2 + $0x20] sm:$0xff]  ;;  %v259_v3 = vsub.f32 %v251_v1, %v1866_v0  ;;  %v1888_v25 = vld [vmem:[#allocation2 + $0x28] sm:$0xff]  ;;  %v260_v30 = vsub.f32 %v252_v24, %v1885_v22  ;;  %v253_v51 = vld [vmem:[#allocation5 + $0x10] sm:$0xff] }
  0x22   :  { %v316_v4 = vld [vmem:[#allocation5 + $0x20] sm:$0xff]  ;;  %v317_v26 = vld [vmem:[#allocation5 + $0x28] sm:$0xff]  ;;  %v1907_v52 = vld [vmem:[#allocation2 + $0x30] sm:$0xff]  ;;  %v261_v57 = vsub.f32 %v253_v51, %v1904_v46 }
  0x23   :  { %v1871_v5 = vld [vmem:[#allocation2 + $0x40] sm:$0xff]  ;;  %v325_v7 = vsub.f32 %v316_v4, %v1868_v2  ;;  %v263_v12 = vmul.f32 %v259_v3, %v259_v3  ;;  %v1892_v31 = vld [vmem:[#allocation2 + $0x48] sm:$0xff]  ;;  %v326_v35 = vsub.f32 %v317_v26, %v1888_v25  ;;  %v264_v41 = vmul.f32 %v260_v30, %v260_v30  ;;  %v318_v53 = vld [vmem:[#allocation5 + $0x30] sm:$0xff] }
  0x24   :  { %v377_v6 = vld [vmem:[#allocation5 + $0x40] sm:$0xff]  ;;  %v378_v32 = vld [vmem:[#allocation5 + $0x48] sm:$0xff]  ;;  %v1910_v58 = vld [vmem:[#allocation2 + $0x50] sm:$0xff]  ;;  %v327_v63 = vsub.f32 %v318_v53, %v1907_v52 }
  0x25   :  { %v386_v8 = vsub.f32 %v377_v6, %v1871_v5  ;;  %v1875_v9 = vld [vmem:[#allocation2 + $0x60] sm:$0xff]  ;;  %v329_v17 = vmul.f32 %v325_v7, %v325_v7  ;;  %v1894_v33 = vld [vmem:[#allocation2 + $0x68] sm:$0xff]  ;;  %v387_v36 = vsub.f32 %v378_v32, %v1892_v31  ;;  %v330_v48 = vmul.f32 %v326_v35, %v326_v35  ;;  %v379_v59 = vld [vmem:[#allocation5 + $0x50] sm:$0xff] }
  0x26   :  { %v438_v10 = vld [vmem:[#allocation5 + $0x60] sm:$0xff]  ;;  %v439_v37 = vld [vmem:[#allocation5 + $0x68] sm:$0xff]  ;;  %v1912_v60 = vld [vmem:[#allocation2 + $0x70] sm:$0xff]  ;;  %v388_v1 = vsub.f32 %v379_v59, %v1910_v58 }
  0x27   :  { %v1877_v11 = vld [vmem:[#allocation2 + $0x80] sm:$0xff]  ;;  %v447_v13 = vsub.f32 %v438_v10, %v1875_v9  ;;  %v390_v18 = vmul.f32 %v386_v8, %v386_v8  ;;  %v363_v27 = vadd.f32 %v329_v17, %v263_v12  ;;  %v1898_v38 = vld [vmem:[#allocation2 + $0x88] sm:$0xff]  ;;  %v448_v42 = vsub.f32 %v439_v37, %v1894_v33  ;;  %v440_v3 = vld [vmem:[#allocation5 + $0x70] sm:$0xff] }
  0x28   :  { %v499_v14 = vld [vmem:[#allocation5 + $0x80] sm:$0xff]  ;;  %v500_v39 = vld [vmem:[#allocation5 + $0x88] sm:$0xff]  ;;  %v391_v49 = vmul.f32 %v387_v36, %v387_v36  ;;  %v364_v61 = vadd.f32 %v330_v48, %v264_v41  ;;  %v1916_v4 = vld [vmem:[#allocation2 + $0x90] sm:$0xff]  ;;  %v265_v8 = vmul.f32 %v261_v57, %v261_v57  ;;  %v449_v10 = vsub.f32 %v440_v3, %v1912_v60 }
  0x29   :  { %v1880_v15 = vld [vmem:[#allocation2 + $0xa0] sm:$0xff]  ;;  %v508_v19 = vsub.f32 %v499_v14, %v1877_v11  ;;  %v451_v28 = vmul.f32 %v447_v13, %v447_v13  ;;  %v424_v40 = vadd.f32 %v390_v18, %v363_v27  ;;  %v509_v43 = vsub.f32 %v500_v39, %v1898_v38  ;;  %v1902_v44 = vld [vmem:[#allocation2 + $0xa8] sm:$0xff]  ;;  %v501_v6 = vld [vmem:[#allocation5 + $0x90] sm:$0xff] }
  0x2a   :  { %v560_v16 = vld [vmem:[#allocation5 + $0xa0] sm:$0xff]  ;;  %v561_v45 = vld [vmem:[#allocation5 + $0xa8] sm:$0xff]  ;;  %v452_v56 = vmul.f32 %v448_v42, %v448_v42  ;;  %v510_v12 = vsub.f32 %v501_v6, %v1916_v4  ;;  %v1920_v13 = vld [vmem:[#allocation2 + $0xb0] sm:$0xff]  ;;  %v425_v17 = vadd.f32 %v391_v49, %v364_v61 }
  0x2b   :  { %v1883_v20 = vld [vmem:[#allocation2 + $0xc0] sm:$0xff]  ;;  %v569_v23 = vsub.f32 %v560_v16, %v1880_v15  ;;  %v512_v34 = vmul.f32 %v508_v19, %v508_v19  ;;  %v570_v50 = vsub.f32 %v561_v45, %v1902_v44  ;;  %v485_v54 = vadd.f32 %v451_v28, %v424_v40  ;;  %v562_v14 = vld [vmem:[#allocation5 + $0xb0] sm:$0xff]  ;;  %v1922_v16 = vld [vmem:[#allocation2 + $0x18] sm:$0xff] }
  0x2c   :  { %v621_v21 = vld [vmem:[#allocation5 + $0xc0] sm:$0xff]  ;;  %v513_v62 = vmul.f32 %v509_v43, %v509_v43  ;;  %v331_v19 = vmul.f32 %v327_v63, %v327_v63  ;;  %v1924_v24 = vld [vmem:[#allocation2 + $0x38] sm:$0xff]  ;;  %v453_v28 = vmul.f32 %v449_v10, %v449_v10  ;;  %v486_v36 = vadd.f32 %v452_v56, %v425_v17 }
  0x2d   :  { %v630_v29 = vsub.f32 %v621_v21, %v1883_v20  ;;  %v573_v47 = vmul.f32 %v569_v23, %v569_v23  ;;  %v546_v7 = vadd.f32 %v512_v34, %v485_v54  ;;  %v574_v18 = vmul.f32 %v570_v50, %v570_v50  ;;  %v254_v23 = vld [vmem:[#allocation5 + $0x18] sm:$0xff]  ;;  %v255_v59 = vld [vmem:[#allocation7] sm:$0xff] }
  0x2e   :  { %v392_v21 = vmul.f32 %v388_v1, %v388_v1  ;;  %v319_v26 = vld [vmem:[#allocation5 + $0x38] sm:$0xff]  ;;  %v262_v30 = vsub.f32 %v254_v23, %v1922_v16  ;;  %v365_v37 = vadd.f32 %v331_v19, %v265_v8  ;;  %v514_v39 = vmul.f32 %v510_v12, %v510_v12  ;;  %v321_v61 = vld [vmem:[#allocation7 + $0x20] sm:$0xff] }
  0x2f   :  { %v634_v55 = vmul.f32 %v630_v29, %v630_v29  ;;  %v607_v27 = vadd.f32 %v573_v47, %v546_v7  ;;  %v571_v29 = vsub.f32 %v562_v14, %v1920_v13  ;;  %v1928_v32 = vld [vmem:[#allocation2 + $0x58] sm:$0xff]  ;;  %v328_v40 = vsub.f32 %v319_v26, %v1924_v24  ;;  %v382_v63 = vld [vmem:[#allocation7 + $0x40] sm:$0xff]  ;;  %v256_v26 = vld [vmem:[#allocation7 + $0x8] sm:$0xff] }
  0x30   :  { %v380_v34 = vld [vmem:[#allocation5 + $0x58] sm:$0xff]  ;;  %v266_v47 = vmul.f32 %v262_v30, %v262_v30  ;;  %v547_v53 = vadd.f32 %v513_v62, %v486_v36  ;;  %v426_v54 = vadd.f32 %v392_v21, %v365_v37  ;;  %v443_v12 = vld [vmem:[#allocation7 + $0x60] sm:$0xff]  ;;  %v267_v19 = vmul.f32 %v255_v59, %v1866_v0  ;;  %v444_v36 = vld [vmem:[#allocation7 + $0x68] sm:$0xff] }
  0x31   :  { %v1930_v35 = vld [vmem:[#allocation2 + $0x78] sm:$0xff]  ;;  %v668_v45 = vadd.f32 %v634_v55, %v607_v27  ;;  %v389_v48 = vsub.f32 %v380_v34, %v1928_v32  ;;  %v332_v56 = vmul.f32 %v328_v40, %v328_v40  ;;  %v575_v1 = vmul.f32 %v571_v29, %v571_v29  ;;  %v504_v14 = vld [vmem:[#allocation7 + $0x80] sm:$0xff]  ;;  %v322_v27 = vld [vmem:[#allocation7 + $0x28] sm:$0xff] }
  0x32   :  { %v441_v41 = vld [vmem:[#allocation5 + $0x78] sm:$0xff]  ;;  %v608_v6 = vadd.f32 %v574_v18, %v547_v53  ;;  %v487_v7 = vadd.f32 %v453_v28, %v426_v54  ;;  %v565_v17 = vld [vmem:[#allocation7 + $0xa0] sm:$0xff]  ;;  %v333_v21 = vmul.f32 %v321_v61, %v1868_v2  ;;  %v394_v23 = vmul.f32 %v382_v63, %v1871_v5  ;;  %v383_v28 = vld [vmem:[#allocation7 + $0x48] sm:$0xff] }
  0x33   :  { %v1933_v42 = vld [vmem:[#allocation2 + $0x98] sm:$0xff]  ;;  %v450_v49 = vsub.f32 %v441_v41, %v1930_v35  ;;  %v393_v3 = vmul.f32 %v389_v48, %v389_v48  ;;  %v366_v8 = vadd.f32 %v332_v56, %v266_v47  ;;  %684 = vst [vmem:[#allocation13] sm:$0xff] %v668_v45  ;;  %v626_v18 = vld [vmem:[#allocation7 + $0xc0] sm:$0xff]  ;;  %v455_v40 = vmul.f32 %v443_v12, %v1875_v9  ;;  %v505_v0 = vld [vmem:[#allocation7 + $0x88] sm:$0xff] }
  0x34   :  { %v502_v43 = vld [vmem:[#allocation5 + $0x98] sm:$0xff]  ;;  %v548_v29 = vadd.f32 %v514_v39, %v487_v7  ;;  %v367_v37 = vadd.f32 %v333_v21, %v267_v19  ;;  %v516_v41 = vmul.f32 %v504_v14, %v1877_v11  ;;  %685 = vst [vmem:[#allocation13 + $0x8] sm:$0xff] %v608_v6  ;;  %v268_v5 = vmul.f32 %v256_v26, %v1885_v22  ;;  %v257_v47 = vld [vmem:[#allocation7 + $0x10] sm:$0xff]  ;;  %v566_v54 = vld [vmem:[#allocation7 + $0xa8] sm:$0xff] }
  0x35   :  { %v1937_v50 = vld [vmem:[#allocation2 + $0xb8] sm:$0xff]  ;;  %v511_v57 = vsub.f32 %v502_v43, %v1933_v42  ;;  %v454_v10 = vmul.f32 %v450_v49, %v450_v49  ;;  %v427_v30 = vadd.f32 %v393_v3, %v366_v8  ;;  %v577_v43 = vmul.f32 %v565_v17, %v1880_v15  ;;  %v323_v48 = vld [vmem:[#allocation7 + $0x30] sm:$0xff]  ;;  %v1960_v17 = vld [vmem:[#allocation8] sm:$0xff] }
  0x36   :  { %v563_v51 = vld [vmem:[#allocation5 + $0xb8] sm:$0xff]  ;;  %v609_v2 = vadd.f32 %v575_v1, %v548_v29  ;;  %v334_v39 = vmul.f32 %v322_v27, %v1888_v25  ;;  %v384_v49 = vld [vmem:[#allocation7 + $0x50] sm:$0xff]  ;;  %v638_v53 = vmul.f32 %v626_v18, %v1883_v20  ;;  %v395_v9 = vmul.f32 %v383_v28, %v1892_v31  ;;  %v790_v26 = vld [vmem:[#allocation10 + $0x40] sm:$0xff] }
  0x37   :  { %v572_v55 = vsub.f32 %v563_v51, %v1937_v50  ;;  %v515_v62 = vmul.f32 %v511_v57, %v511_v57  ;;  %v488_v45 = vadd.f32 %v454_v10, %v427_v30  ;;  %v428_v51 = vadd.f32 %v394_v23, %v367_v37  ;;  %v445_v15 = vld [vmem:[#allocation7 + $0x70] sm:$0xff]  ;;  %v258_v22 = vld [vmem:[#allocation7 + $0x18] sm:$0xff]  ;;  %v1966_v23 = vld [vmem:[#allocation8 + $0x40] sm:$0xff] }
  0x38   :  { %v456_v11 = vmul.f32 %v444_v36, %v1894_v33  ;;  %v368_v57 = vadd.f32 %v334_v39, %v268_v5  ;;  %v517_v59 = vmul.f32 %v505_v0, %v1898_v38  ;;  %v506_v61 = vld [vmem:[#allocation7 + $0x90] sm:$0xff]  ;;  %v269_v25 = vmul.f32 %v257_v47, %v1904_v46  ;;  %v324_v20 = vld [vmem:[#allocation7 + $0x38] sm:$0xff]  ;;  %686 = vst [vmem:[#allocation13 + $0x10] sm:$0xff] %v609_v2  ;;  %v1970_v30 = vld [vmem:[#allocation8 + $0x60] sm:$0xff] }
  0x39   :  { %v576_v34 = vmul.f32 %v572_v55, %v572_v55  ;;  %v549_v56 = vadd.f32 %v515_v62, %v488_v45  ;;  %v489_v63 = vadd.f32 %v455_v40, %v428_v51  ;;  %v335_v1 = vmul.f32 %v323_v48, %v1907_v52  ;;  %v385_v55 = vld [vmem:[#allocation7 + $0x58] sm:$0xff]  ;;  %v567_v8 = vld [vmem:[#allocation7 + $0xb0] sm:$0xff]  ;;  %v1962_v62 = vld [vmem:[#allocation8 + $0x20] sm:$0xff] }
  0x3a   :  { %v396_v3 = vmul.f32 %v384_v49, %v1910_v58  ;;  %v429_v33 = vadd.f32 %v395_v9, %v368_v57  ;;  %v578_v6 = vmul.f32 %v566_v54, %v1902_v44  ;;  %v457_v7 = vmul.f32 %v445_v15, %v1912_v60  ;;  %v446_v38 = vld [vmem:[#allocation7 + $0x78] sm:$0xff]  ;;  %v705_v58 = vld [vmem:[#allocation10] sm:$0xff]  ;;  %v1983_v49 = vld [vmem:[#allocation8 + $0x8] sm:$0xff] }
  0x3b   :  { %v610_v31 = vadd.f32 %v576_v34, %v549_v56  ;;  %v507_v10 = vld [vmem:[#allocation7 + $0x98] sm:$0xff]  ;;  %v550_v12 = vadd.f32 %v516_v41, %v489_v63  ;;  %v369_v14 = vadd.f32 %v335_v1, %v269_v25  ;;  %v518_v46 = vmul.f32 %v506_v61, %v1916_v4  ;;  %v747_v60 = vld [vmem:[#allocation10 + $0x20] sm:$0xff]  ;;  %v1985_v54 = vld [vmem:[#allocation8 + $0x28] sm:$0xff] }
  0x3c   :  { %v270_v52 = vmul.f32 %v258_v22, %v1922_v16  ;;  %v490_v19 = vadd.f32 %v456_v11, %v429_v33  ;;  %v336_v21 = vmul.f32 %v324_v20, %v1924_v24  ;;  %v397_v44 = vmul.f32 %v385_v55, %v1928_v32  ;;  %v833_v34 = vld [vmem:[#allocation10 + $0x60] sm:$0xff]  ;;  %v568_v36 = vld [vmem:[#allocation7 + $0xb8] sm:$0xff]  ;;  %v706_v11 = vld [vmem:[#allocation10 + $0x8] sm:$0xff] }
  0x3d   :  { %v611_v27 = vadd.f32 %v577_v43, %v550_v12  ;;  %v430_v29 = vadd.f32 %v396_v3, %v369_v14  ;;  %v579_v4 = vmul.f32 %v567_v8, %v1920_v13  ;;  %v458_v16 = vmul.f32 %v446_v38, %v1930_v35  ;;  %687 = vst [vmem:[#allocation13 + $0x18] sm:$0xff] %v610_v31  ;;  %v1974_v37 = vld [vmem:[#allocation8 + $0x80] sm:$0xff]  ;;  %v748_v15 = vld [vmem:[#allocation10 + $0x28] sm:$0xff] }
  0x3e   :  { %v551_v18 = vadd.f32 %v517_v59, %v490_v19  ;;  %v370_v28 = vadd.f32 %v336_v21, %v270_v52  ;;  %v519_v24 = vmul.f32 %v507_v10, %v1933_v42  ;;  %v713_v32 = vsub.f32 %v705_v58, %v1960_v17  ;;  %v876_v35 = vld [vmem:[#allocation10 + $0x80] sm:$0xff]  ;;  %v1989_v61 = vld [vmem:[#allocation8 + $0x48] sm:$0xff]  ;;  %v2001_v52 = vld [vmem:[#allocation8 + $0x10] sm:$0xff] }
  0x3f   :  { %v672_v40 = vadd.f32 %v638_v53, %v611_v27  ;;  %v491_v41 = vadd.f32 %v457_v7, %v430_v29  ;;  %v756_v43 = vsub.f32 %v747_v60, %v1962_v62  ;;  %v799_v13 = vsub.f32 %v790_v26, %v1966_v23  ;;  %v1978_v0 = vld [vmem:[#allocation8 + $0xa0] sm:$0xff]  ;;  %v791_v22 = vld [vmem:[#allocation10 + $0x48] sm:$0xff]  ;;  %v707_v58 = vld [vmem:[#allocation10 + $0x10] sm:$0xff] }
  0x40   :  { %v919_v2 = vld [vmem:[#allocation10 + $0xa0] sm:$0xff]  ;;  %v612_v45 = vadd.f32 %v578_v6, %v551_v18  ;;  %v431_v5 = vadd.f32 %v397_v44, %v370_v28  ;;  %v717_v39 = vmul.f32 %v713_v32, %v713_v32  ;;  %v842_v42 = vsub.f32 %v833_v34, %v1970_v30  ;;  %v1992_v20 = vld [vmem:[#allocation8 + $0x68] sm:$0xff]  ;;  %v2004_v26 = vld [vmem:[#allocation8 + $0x30] sm:$0xff] }
  0x41   :  { %v1981_v47 = vld [vmem:[#allocation8 + $0xc0] sm:$0xff]  ;;  %v552_v51 = vadd.f32 %v518_v46, %v491_v41  ;;  %v760_v53 = vmul.f32 %v756_v43, %v756_v43  ;;  %v803_v9 = vmul.f32 %v799_v13, %v799_v13  ;;  %v580_v57 = vmul.f32 %v568_v36, %v1937_v50  ;;  %697 = vst [vmem:[#allocation13 + $0x20] sm:$0xff] %v672_v40  ;;  %v834_v55 = vld [vmem:[#allocation10 + $0x68] sm:$0xff]  ;;  %v749_v27 = vld [vmem:[#allocation10 + $0x30] sm:$0xff] }
  0x42   :  { %v962_v48 = vld [vmem:[#allocation10 + $0xc0] sm:$0xff]  ;;  %v492_v56 = vadd.f32 %v458_v16, %v431_v5  ;;  %v885_v59 = vsub.f32 %v876_v35, %v1974_v37  ;;  %v846_v1 = vmul.f32 %v842_v42, %v842_v42  ;;  %v928_v3 = vsub.f32 %v919_v2, %v1978_v0  ;;  %v1994_v31 = vld [vmem:[#allocation8 + $0x88] sm:$0xff]  ;;  %698 = vst [vmem:[#allocation13 + $0x28] sm:$0xff] %v612_v45  ;;  %v2009_v18 = vld [vmem:[#allocation8 + $0x50] sm:$0xff] }
  0x43   :  { %v613_v63 = vadd.f32 %v579_v4, %v552_v51  ;;  %v776_v25 = vadd.f32 %v760_v53, %v717_v39  ;;  %v971_v50 = vsub.f32 %v962_v48, %v1981_v47  ;;  %v714_v6 = vsub.f32 %v706_v11, %v1983_v49  ;;  %v877_v8 = vld [vmem:[#allocation10 + $0x88] sm:$0xff]  ;;  %v792_v28 = vld [vmem:[#allocation10 + $0x50] sm:$0xff]  ;;  %v2018_v42 = vld [vmem:[#allocation8 + $0x18] sm:$0xff] }
  0x44   :  { %v553_v33 = vadd.f32 %v519_v24, %v492_v56  ;;  %v757_v7 = vsub.f32 %v748_v15, %v1985_v54  ;;  %v1999_v38 = vld [vmem:[#allocation8 + $0xa8] sm:$0xff]  ;;  %v889_v14 = vmul.f32 %v885_v59, %v885_v59  ;;  %v932_v46 = vmul.f32 %v928_v3, %v928_v3  ;;  %v2011_v24 = vld [vmem:[#allocation8 + $0x70] sm:$0xff]  ;;  %v708_v48 = vld [vmem:[#allocation10 + $0x18] sm:$0xff] }
  0x45   :  { %v920_v10 = vld [vmem:[#allocation10 + $0xa8] sm:$0xff]  ;;  %v819_v12 = vadd.f32 %v803_v9, %v776_v25  ;;  %v718_v21 = vmul.f32 %v714_v6, %v714_v6  ;;  %v800_v60 = vsub.f32 %v791_v22, %v1989_v61  ;;  %699 = vst [vmem:[#allocation13 + $0x30] sm:$0xff] %v613_v63  ;;  %v843_v4 = vsub.f32 %v834_v55, %v1992_v20  ;;  %v835_v41 = vld [vmem:[#allocation10 + $0x70] sm:$0xff]  ;;  %v2022_v56 = vld [vmem:[#allocation8 + $0x38] sm:$0xff] }
  0x46   :  { %v614_v19 = vadd.f32 %v580_v57, %v553_v33  ;;  %v761_v44 = vmul.f32 %v757_v7, %v757_v7  ;;  %v886_v16 = vsub.f32 %v877_v8, %v1994_v31  ;;  %v929_v34 = vsub.f32 %v920_v10, %v1999_v38  ;;  %v2014_v43 = vld [vmem:[#allocation8 + $0x90] sm:$0xff]  ;;  %v750_v57 = vld [vmem:[#allocation10 + $0x38] sm:$0xff] }
  0x47   :  { %v862_v29 = vadd.f32 %v846_v1, %v819_v12  ;;  %v804_v32 = vmul.f32 %v800_v60, %v800_v60  ;;  %v715_v40 = vsub.f32 %v707_v58, %v2001_v52  ;;  %v878_v13 = vld [vmem:[#allocation10 + $0x90] sm:$0xff]  ;;  %v975_v2 = vmul.f32 %v971_v50, %v971_v50  ;;  %v2026_v1 = vld [vmem:[#allocation8 + $0x58] sm:$0xff] }
  0x48   :  { %v777_v36 = vadd.f32 %v761_v44, %v718_v21  ;;  %v847_v45 = vmul.f32 %v843_v4, %v843_v4  ;;  %v890_v5 = vmul.f32 %v886_v16, %v886_v16  ;;  %v2016_v39 = vld [vmem:[#allocation8 + $0xb0] sm:$0xff]  ;;  %700 = vst [vmem:[#allocation13 + $0x38] sm:$0xff] %v614_v19  ;;  %v758_v9 = vsub.f32 %v749_v27, %v2004_v26  ;;  %v793_v3 = vld [vmem:[#allocation10 + $0x58] sm:$0xff]  ;;  %v709_v16 = vld [vmem:[#allocation11] sm:$0xff] }
  0x49   :  { %v905_v35 = vadd.f32 %v889_v14, %v862_v29  ;;  %v719_v53 = vmul.f32 %v715_v40, %v715_v40  ;;  %v801_v11 = vsub.f32 %v792_v28, %v2009_v18  ;;  %v921_v15 = vld [vmem:[#allocation10 + $0xb0] sm:$0xff]  ;;  %v933_v22 = vmul.f32 %v929_v34, %v929_v34  ;;  %v2028_v55 = vld [vmem:[#allocation8 + $0x78] sm:$0xff] }
  0x4a   :  { %v820_v51 = vadd.f32 %v804_v32, %v777_v36  ;;  %v844_v63 = vsub.f32 %v835_v41, %v2011_v24  ;;  %v887_v25 = vsub.f32 %v878_v13, %v2014_v43  ;;  %v762_v50 = vmul.f32 %v758_v9, %v758_v9  ;;  %v836_v8 = vld [vmem:[#allocation10 + $0x78] sm:$0xff] }
  0x4b   :  { %v948_v59 = vadd.f32 %v932_v46, %v905_v35  ;;  %v805_v6 = vmul.f32 %v801_v11, %v801_v11  ;;  %v716_v7 = vsub.f32 %v708_v48, %v2018_v42  ;;  %v2031_v10 = vld [vmem:[#allocation8 + $0x98] sm:$0xff]  ;;  %v930_v19 = vsub.f32 %v921_v15, %v2016_v39  ;;  %v752_v35 = vld [vmem:[#allocation11 + $0x20] sm:$0xff] }
  0x4c   :  { %v863_v33 = vadd.f32 %v847_v45, %v820_v51  ;;  %v879_v12 = vld [vmem:[#allocation10 + $0x98] sm:$0xff]  ;;  %v848_v46 = vmul.f32 %v844_v63, %v844_v63  ;;  %v891_v58 = vmul.f32 %v887_v25, %v887_v25  ;;  %v778_v27 = vadd.f32 %v762_v50, %v719_v53  ;;  %v838_v51 = vld [vmem:[#allocation11 + $0x60] sm:$0xff]  ;;  %v796_v63 = vld [vmem:[#allocation11 + $0x48] sm:$0xff] }
  0x4d   :  { %v991_v14 = vadd.f32 %v975_v2, %v948_v59  ;;  %v2034_v21 = vld [vmem:[#allocation8 + $0xb8] sm:$0xff]  ;;  %v720_v29 = vmul.f32 %v716_v7, %v716_v7  ;;  %v759_v4 = vsub.f32 %v750_v57, %v2022_v56  ;;  %v802_v34 = vsub.f32 %v793_v3, %v2026_v1  ;;  %v795_v2 = vld [vmem:[#allocation11 + $0x40] sm:$0xff]  ;;  %v710_v57 = vld [vmem:[#allocation11 + $0x8] sm:$0xff] }
  0x4e   :  { %v922_v44 = vld [vmem:[#allocation10 + $0xb8] sm:$0xff]  ;;  %v906_v60 = vadd.f32 %v890_v5, %v863_v33  ;;  %v845_v28 = vsub.f32 %v836_v8, %v2028_v55  ;;  %v888_v36 = vsub.f32 %v879_v12, %v2031_v10  ;;  %v821_v40 = vadd.f32 %v805_v6, %v778_v27  ;;  %v881_v53 = vld [vmem:[#allocation11 + $0x80] sm:$0xff]  ;;  %v753_v59 = vld [vmem:[#allocation11 + $0x28] sm:$0xff] }
  0x4f   :  { %v763_v41 = vmul.f32 %v759_v4, %v759_v4  ;;  %v931_v13 = vsub.f32 %v922_v44, %v2034_v21  ;;  %1008 = vst [vmem:[#allocation13 + $0x40] sm:$0xff] %v991_v14  ;;  %v934_v45 = vmul.f32 %v930_v19, %v930_v19  ;;  %v806_v5 = vmul.f32 %v802_v34, %v802_v34  ;;  %v924_v50 = vld [vmem:[#allocation11 + $0xa0] sm:$0xff]  ;;  %v839_v14 = vld [vmem:[#allocation11 + $0x68] sm:$0xff]  ;;  %v754_v27 = vld [vmem:[#allocation11 + $0x30] sm:$0xff] }
  0x50   :  { %v949_v32 = vadd.f32 %v933_v22, %v906_v60  ;;  %v721_v48 = vmul.f32 %v709_v16, %v1960_v17  ;;  %v864_v9 = vadd.f32 %v848_v46, %v821_v40  ;;  %v849_v15 = vmul.f32 %v845_v28, %v845_v28  ;;  %v967_v6 = vld [vmem:[#allocation11 + $0xc0] sm:$0xff]  ;;  %v711_v46 = vld [vmem:[#allocation11 + $0x10] sm:$0xff]  ;;  %v925_v34 = vld [vmem:[#allocation11 + $0xa8] sm:$0xff] }
  0x51   :  { %v779_v11 = vadd.f32 %v763_v41, %v720_v29  ;;  %v892_v22 = vmul.f32 %v888_v36, %v888_v36  ;;  %v935_v25 = vmul.f32 %v931_v13, %v931_v13  ;;  %v764_v3 = vmul.f32 %v752_v35, %v1962_v62  ;;  %v755_v13 = vld [vmem:[#allocation11 + $0x38] sm:$0xff] }
  0x52   :  { %v807_v33 = vmul.f32 %v795_v2, %v1966_v23  ;;  %1009 = vst [vmem:[#allocation13 + $0x48] sm:$0xff] %v949_v32  ;;  %v907_v7 = vadd.f32 %v891_v58, %v864_v9  ;;  %v850_v17 = vmul.f32 %v838_v51, %v1970_v30  ;;  %v893_v12 = vmul.f32 %v881_v53, %v1974_v37  ;;  %v797_v23 = vld [vmem:[#allocation11 + $0x50] sm:$0xff]  ;;  %v882_v30 = vld [vmem:[#allocation11 + $0x88] sm:$0xff]  ;;  %v798_v35 = vld [vmem:[#allocation11 + $0x58] sm:$0xff] }
  0x53   :  { %v822_v8 = vadd.f32 %v806_v5, %v779_v11  ;;  %v780_v19 = vadd.f32 %v764_v3, %v721_v48  ;;  %v722_v44 = vmul.f32 %v710_v57, %v1983_v49  ;;  %v765_v60 = vmul.f32 %v753_v59, %v1985_v54  ;;  %v840_v32 = vld [vmem:[#allocation11 + $0x70] sm:$0xff]  ;;  %v712_v54 = vld [vmem:[#allocation11 + $0x18] sm:$0xff] }
  0x54   :  { %v808_v62 = vmul.f32 %v796_v63, %v1989_v61  ;;  %v950_v29 = vadd.f32 %v934_v45, %v907_v7  ;;  %v936_v58 = vmul.f32 %v924_v50, %v1978_v0  ;;  %v979_v16 = vmul.f32 %v967_v6, %v1981_v47  ;;  %v883_v5 = vld [vmem:[#allocation11 + $0x90] sm:$0xff]  ;;  %v841_v53 = vld [vmem:[#allocation11 + $0x78] sm:$0xff] }
  0x55   :  { %v865_v4 = vadd.f32 %v849_v15, %v822_v8  ;;  %v823_v37 = vadd.f32 %v807_v33, %v780_v19  ;;  %v781_v28 = vadd.f32 %v765_v60, %v722_v44  ;;  %v851_v36 = vmul.f32 %v839_v14, %v1992_v20  ;;  %v927_v3 = vld [vmem:[#allocation11 + $0xb8] sm:$0xff] }
  0x56   :  { %v723_v49 = vmul.f32 %v711_v46, %v2001_v52  ;;  %v766_v61 = vmul.f32 %v754_v27, %v2004_v26  ;;  %v809_v41 = vmul.f32 %v797_v23, %v2009_v18  ;;  %v894_v47 = vmul.f32 %v882_v30, %v1994_v31  ;;  %1010 = vst [vmem:[#allocation13 + $0x50] sm:$0xff] %v950_v29  ;;  %v926_v18 = vld [vmem:[#allocation11 + $0xb0] sm:$0xff] }
  0x57   :  { %v908_v40 = vadd.f32 %v892_v22, %v865_v4  ;;  %v866_v0 = vadd.f32 %v850_v17, %v823_v37  ;;  %v824_v2 = vadd.f32 %v808_v62, %v781_v28  ;;  %v937_v45 = vmul.f32 %v925_v34, %v1999_v38  ;;  %v884_v38 = vld [vmem:[#allocation11 + $0x98] sm:$0xff] }
  0x58   :  { %v782_v48 = vadd.f32 %v766_v61, %v723_v49  ;;  %v852_v52 = vmul.f32 %v840_v32, %v2011_v24  ;;  %v724_v51 = vmul.f32 %v712_v54, %v2018_v42  ;;  %v767_v11 = vmul.f32 %v755_v13, %v2022_v56 }
  0x59   :  { %v951_v20 = vadd.f32 %v935_v25, %v908_v40  ;;  %v909_v26 = vadd.f32 %v893_v12, %v866_v0  ;;  %v867_v9 = vadd.f32 %v851_v36, %v824_v2  ;;  %v810_v15 = vmul.f32 %v798_v35, %v2026_v1 }
  0x5a   :  { %v825_v57 = vadd.f32 %v809_v41, %v782_v48  ;;  %v895_v31 = vmul.f32 %v883_v5, %v2014_v43  ;;  %v783_v22 = vadd.f32 %v767_v11, %v724_v51  ;;  %v853_v25 = vmul.f32 %v841_v53, %v2028_v55 }
  0x5b   :  { %v952_v59 = vadd.f32 %v936_v58, %v909_v26  ;;  %v910_v63 = vadd.f32 %v894_v47, %v867_v9  ;;  %1011 = vst [vmem:[#allocation13 + $0x58] sm:$0xff] %v951_v20  ;;  %v938_v42 = vmul.f32 %v926_v18, %v2016_v39  ;;  %v896_v56 = vmul.f32 %v884_v38, %v2031_v10 }
  0x5c   :  { %v868_v24 = vadd.f32 %v852_v52, %v825_v57  ;;  %v826_v6 = vadd.f32 %v810_v15, %v783_v22  ;;  %v939_v43 = vmul.f32 %v927_v3, %v2034_v21 }
  0x5d   :  { %v995_v33 = vadd.f32 %v979_v16, %v952_v59  ;;  %v953_v50 = vadd.f32 %v937_v45, %v910_v63 }
  0x5e   :  { %v911_v1 = vadd.f32 %v895_v31, %v868_v24  ;;  %v869_v7 = vadd.f32 %v853_v25, %v826_v6 }
  0x5f   :  { %1021 = vst [vmem:[#allocation13 + $0x60] sm:$0xff] %v995_v33 }
  0x60   :  { %v954_v8 = vadd.f32 %v938_v42, %v911_v1  ;;  %v912_v17 = vadd.f32 %v896_v56, %v869_v7  ;;  %1022 = vst [vmem:[#allocation13 + $0x68] sm:$0xff] %v953_v50 }
  0x62   :  { %v955_v39 = vadd.f32 %v939_v43, %v912_v17  ;;  %1023 = vst [vmem:[#allocation13 + $0x70] sm:$0xff] %v954_v8 }
  0x64   :  { %1024 = vst [vmem:[#allocation13 + $0x78] sm:$0xff] %v955_v39 }
  0x65   :  { %1576 = dma.vmem_to_hbm [thread:$0]  %s1569_s5, 2048, %s1571_s29, [#allocation4], %s1787_s26, %s1787_s26, %s1788_s27  }
  0x66   :  { %1784 = dma.done.wait [#allocation4], 2048  }
  0x67   :  { %1785 = vsyncadd [#allocation4], 4294965248 }
  0x68   :  { %1581 = vsyncpa [#allocation3], 1 }
  0x69   :  { %1582 = vsyncpa [#allocation6], 1 }
  0x6a   :  { %1583 = vsyncpa [#allocation9], 1 }
  0x6b   :  { %1584 = vsyncpa [#allocation12], 1 }
  0x6c   :  { %1585 = vsyncpa [#allocation4], 1 }

</bundles_post_ra>
